<compile_context>
chip_gen: v6e
topology: v6e:2x2x1
jax: 0.10.0
libtpu: 0.0.40
codegen_flags: <defaults>
</compile_context>

<pallas_src>
import jax
import jax.numpy as jnp
from jax import lax
from jax.experimental import pallas as pl
from jax.experimental.pallas import tpu as pltpu


EMBED_DIM = 16                 # output features of the second Linear
HIDDEN = 32                    # hidden width of the first Linear
IN_FEATURES = 2                # chi (1) + action (1)
GROUP = 128 // EMBED_DIM       # batch elements packed into one 128-lane row (= 8)
assert GROUP * EMBED_DIM == 128

_DEFAULT_TILE_B = 8192         # batch elements per grid step


def _cdiv(a, b):
    return -(-a // b)


def _round_up(n, m):
    return _cdiv(n, m) * m


def _mlp_kernel(chi_ref, act_ref, l1_ref, w2b_ref, b2p_ref, o_ref):
    """One batch tile of the 2->32->16 ReLU MLP, emitted in packed layout.

    chi_ref, act_ref: [GROUP, 1, TG]  value (j, 0, r) = input of batch b = 8*(g0+r)+j
    l1_ref:           [3, 32, 1]      rows: w1[0,:] (chi), w1[1,:] (action), b1
    w2b_ref:          [GROUP, 16, 32] W2^T replicated over the j groups
    b2p_ref:          [1, 128]        b2 tiled GROUP times (lane c = j*16 + f)
    o_ref:            [TG, 128]       packed output: o[r, j*16+f] = out[8*(g0+r)+j, f]
    """
    chi = chi_ref[...]                       # [8, 1, TG]
    act = act_ref[...]                       # [8, 1, TG]
    w1c = l1_ref[0]                          # [32, 1]
    w1a = l1_ref[1]                          # [32, 1]
    b1 = l1_ref[2]                           # [32, 1]

    # Layer 1 on the VPU: broadcast FMAs + ReLU -> [8, 32, TG] (lane-dense).
    h = jnp.maximum(chi * w1c + act * w1a + b1, 0.0)

    # Layer 2 on the MXU: batched [16,32] @ [32,TG] per group -> [8, 16, TG].
    y = jnp.einsum(
        "jfk,jkr->jfr", w2b_ref[...], h,
        preferred_element_type=jnp.float32,
        precision=lax.Precision.HIGHEST)

    # Pack: collapse (8,16) -> 128 (layout-preserving reshape), then one dense
    # [128, TG] -> [TG, 128] XLU transpose; fuse bias + ReLU; full-lane store.
    tg = o_ref.shape[0]
    y_packed = jnp.transpose(y.reshape(GROUP * EMBED_DIM, tg))   # [TG, 128]
    o_ref[...] = jnp.maximum(y_packed + b2p_ref[...], 0.0).astype(o_ref.dtype)


def chi_action_embedding(chi, action, params, *, tile_b=_DEFAULT_TILE_B,
                         out_dtype=jnp.float32):
    """chi: [B, 1] (or [B]), action: [B, 1] -> [B, EMBED_DIM] (PyTorch layout)."""
    w1, b1, w2, b2 = params   # w1: [2,32], b1: [1,32], w2: [32,16], b2: [1,16]

    chi_flat = jnp.asarray(chi, jnp.float32).reshape(-1)
    act_flat = jnp.asarray(action, jnp.float32).reshape(-1)
    batch = chi_flat.shape[0]

    # Group the batch in runs of 8 (one packed 128-lane output row per group).
    n_groups = _cdiv(batch, GROUP)
    batch_pad = n_groups * GROUP
    if batch_pad != batch:
        chi_flat = jnp.pad(chi_flat, (0, batch_pad - batch))
        act_flat = jnp.pad(act_flat, (0, batch_pad - batch))

    # Layout crossing on the cheap side (inputs, 4 B/elem each):
    # [B] -> [G, 8] (free reshape) -> [8, G] (tiny XLA transpose) -> [8, 1, G].
    chi2 = chi_flat.reshape(n_groups, GROUP).T.reshape(GROUP, 1, n_groups)
    act2 = act_flat.reshape(n_groups, GROUP).T.reshape(GROUP, 1, n_groups)

    # Batch tile (lane dim, in units of 8-element groups): multiple of 128,
    # >= 2 grid steps when the batch allows (feeds both v7x TensorCores),
    # capped near the array extent for small batches.
    tile_g = _round_up(max(1, min(tile_b // GROUP, _cdiv(n_groups, 2))), 128)
    tile_g = min(tile_g, _round_up(n_groups, 128))
    grid = (_cdiv(n_groups, tile_g),)

    # Constants, consolidated into three small VMEM-resident operands.
    w1 = jnp.asarray(w1, jnp.float32)
    l1 = jnp.stack([w1[0].reshape(HIDDEN, 1),
                    w1[1].reshape(HIDDEN, 1),
                    jnp.asarray(b1, jnp.float32).reshape(HIDDEN, 1)])     # [3,32,1]
    w2b = jnp.broadcast_to(jnp.asarray(w2, jnp.float32).T,
                           (GROUP, EMBED_DIM, HIDDEN))                    # [8,16,32]
    b2p = jnp.tile(jnp.asarray(b2, jnp.float32).reshape(1, EMBED_DIM),
                   (1, GROUP))                                            # [1,128]

    batch_spec = pl.BlockSpec((GROUP, 1, tile_g), lambda i: (0, 0, i))
    out_spec = pl.BlockSpec((tile_g, GROUP * EMBED_DIM), lambda i: (i, 0))

    # Advisory cost estimate: tiny-FLOP, HBM-streaming workload.
    flops = 2 * batch_pad * (IN_FEATURES * HIDDEN + HIDDEN * EMBED_DIM)
    bytes_accessed = 4 * (IN_FEATURES * batch_pad + EMBED_DIM * batch_pad
                          + 3 * HIDDEN + GROUP * EMBED_DIM * HIDDEN + 128)

    out_packed = pl.pallas_call(
        _mlp_kernel,
        out_shape=jax.ShapeDtypeStruct((n_groups, GROUP * EMBED_DIM), out_dtype),
        grid=grid,
        in_specs=[
            batch_spec,                                               # chi  [8,1,G]
            batch_spec,                                               # act  [8,1,G]
            pl.BlockSpec((3, HIDDEN, 1), lambda i: (0, 0, 0)),        # l1 pack
            pl.BlockSpec((GROUP, EMBED_DIM, HIDDEN),
                         lambda i: (0, 0, 0)),                        # w2^T (batched)
            pl.BlockSpec((1, GROUP * EMBED_DIM), lambda i: (0, 0)),   # b2 packed
        ],
        out_specs=out_spec,
        compiler_params=pltpu.CompilerParams(
            dimension_semantics=("parallel",)),
        cost_estimate=pl.CostEstimate(
            flops=flops, transcendentals=0, bytes_accessed=bytes_accessed),
    )(chi2, act2, l1, w2b, b2p)

    # Row-major [G, 128] == row-major [8G, 16]: the conversion is a free
    # reshape; the slice only triggers (and copies B*16*4 bytes) when B%8 != 0.
    out = out_packed.reshape(batch_pad, EMBED_DIM)
    if batch_pad != batch:
        out = out[:batch]
    return out


def init_params(key):
    """Deterministic init mimicking nn.Linear's U(-1/sqrt(fan_in), 1/sqrt(fan_in))."""
    k1, k2, k3, k4 = jax.random.split(key, 4)
    bound1 = 1.0 / jnp.sqrt(IN_FEATURES)
    bound2 = 1.0 / jnp.sqrt(HIDDEN)
    w1 = jax.random.uniform(k1, (IN_FEATURES, HIDDEN), jnp.float32, -bound1, bound1)
    b1 = jax.random.uniform(k2, (1, HIDDEN), jnp.float32, -bound1, bound1)
    w2 = jax.random.uniform(k3, (HIDDEN, EMBED_DIM), jnp.float32, -bound2, bound2)
    b2 = jax.random.uniform(k4, (1, EMBED_DIM), jnp.float32, -bound2, bound2)
    return w1, b1, w2, b2


def _reference(chi, action, params):
    w1, b1, w2, b2 = params
    x = jnp.concatenate([chi, action], axis=1)
    h = jnp.maximum(jnp.dot(x, w1, precision=lax.Precision.HIGHEST) + b1, 0.0)
    return jnp.maximum(jnp.dot(h, w2, precision=lax.Precision.HIGHEST) + b2, 0.0)


if __name__ == "__main__":
    key = jax.random.PRNGKey(0)
    params = init_params(jax.random.fold_in(key, 0))

    # Small aligned case plus a multi-tile ragged case (batch not a multiple of
    # 8 or 128) so the masked partial blocks and the final slice are exercised.
    for batch in (8, 1500):
        kc, ka = jax.random.split(jax.random.fold_in(key, batch))
        chi = jax.random.normal(kc, (batch, 1), jnp.float32)
        action = jax.random.normal(ka, (batch, 1), jnp.float32)

        out = jax.block_until_ready(chi_action_embedding(chi, action, params))
        ref = _reference(chi, action, params)

        assert out.shape == (batch, EMBED_DIM), out.shape
        assert jnp.allclose(out, ref, atol=1e-5, rtol=1e-5), (
            f"mismatch at batch={batch}: "
            f"max abs err {float(jnp.max(jnp.abs(out - ref)))}")

    print("KERNEL_OK")
</pallas_src>

<mosaic_0001>
module attributes {stable_mosaic.version = 11 : i64} {
  func.func @_mlp_kernel(%arg0: i32, %arg1: memref<8x1x128xf32, #tpu.memory_space<vmem>>, %arg2: memref<8x1x128xf32, #tpu.memory_space<vmem>>, %arg3: memref<3x32x1xf32, #tpu.memory_space<vmem>>, %arg4: memref<8x16x32xf32, #tpu.memory_space<vmem>>, %arg5: memref<1x128xf32, #tpu.memory_space<vmem>>, %arg6: memref<128x128xf32, #tpu.memory_space<vmem>>) attributes {dimension_semantics = [#tpu.dimension_semantics<parallel>], iteration_bounds = array<i64: 1>, scalar_prefetch = 0 : i64, scratch_operands = 0 : i64, tpu.core_type = #tpu.core_type<tc>, window_params = [{transform_indices = @transform_0, window_bounds = array<i64: 8, 1, 128>}, {transform_indices = @transform_1, window_bounds = array<i64: 8, 1, 128>}, {pipeline_mode = #tpu.pipeline_mode<synchronous>, transform_indices = @transform_2, window_bounds = array<i64: 3, 32, 1>}, {pipeline_mode = #tpu.pipeline_mode<synchronous>, transform_indices = @transform_3, window_bounds = array<i64: 8, 16, 32>}, {pipeline_mode = #tpu.pipeline_mode<synchronous>, transform_indices = @transform_4, window_bounds = array<i64: 1, 128>}, {transform_indices = @transform_5, window_bounds = array<i64: 128, 128>}]} {
    %c0 = arith.constant 0 : index
    %c0_0 = arith.constant 0 : index
    %c0_1 = arith.constant 0 : index
    %0 = vector.load %arg1[%c0, %c0_0, %c0_1] : memref<8x1x128xf32, #tpu.memory_space<vmem>>, vector<8x1x128xf32>
    %c0_2 = arith.constant 0 : index
    %c0_3 = arith.constant 0 : index
    %c0_4 = arith.constant 0 : index
    %1 = vector.load %arg2[%c0_2, %c0_3, %c0_4] : memref<8x1x128xf32, #tpu.memory_space<vmem>>, vector<8x1x128xf32>
    %c0_5 = arith.constant 0 : index
    %c0_6 = arith.constant 0 : index
    %c0_7 = arith.constant 0 : index
    %2 = vector.load %arg3[%c0_5, %c0_6, %c0_7] : memref<3x32x1xf32, #tpu.memory_space<vmem>>, vector<1x32x1xf32>
    %3 = vector.shape_cast %2 : vector<1x32x1xf32> to vector<32x1xf32>
    %c1 = arith.constant 1 : index
    %c0_8 = arith.constant 0 : index
    %c0_9 = arith.constant 0 : index
    %4 = vector.load %arg3[%c1, %c0_8, %c0_9] : memref<3x32x1xf32, #tpu.memory_space<vmem>>, vector<1x32x1xf32>
    %5 = vector.shape_cast %4 : vector<1x32x1xf32> to vector<32x1xf32>
    %c2 = arith.constant 2 : index
    %c0_10 = arith.constant 0 : index
    %c0_11 = arith.constant 0 : index
    %6 = vector.load %arg3[%c2, %c0_10, %c0_11] : memref<3x32x1xf32, #tpu.memory_space<vmem>>, vector<1x32x1xf32>
    %7 = vector.shape_cast %6 : vector<1x32x1xf32> to vector<32x1xf32>
    %8 = vector.shape_cast %3 : vector<32x1xf32> to vector<1x32x1xf32>
    %9 = vector.broadcast %0 : vector<8x1x128xf32> to vector<8x32x128xf32>
    %10 = vector.broadcast %8 : vector<1x32x1xf32> to vector<8x32x128xf32>
    %11 = arith.mulf %9, %10 : vector<8x32x128xf32>
    %12 = vector.shape_cast %5 : vector<32x1xf32> to vector<1x32x1xf32>
    %13 = vector.broadcast %1 : vector<8x1x128xf32> to vector<8x32x128xf32>
    %14 = vector.broadcast %12 : vector<1x32x1xf32> to vector<8x32x128xf32>
    %15 = arith.mulf %13, %14 : vector<8x32x128xf32>
    %16 = arith.addf %11, %15 : vector<8x32x128xf32>
    %17 = vector.shape_cast %7 : vector<32x1xf32> to vector<1x32x1xf32>
    %18 = vector.broadcast %17 : vector<1x32x1xf32> to vector<8x32x128xf32>
    %19 = arith.addf %16, %18 : vector<8x32x128xf32>
    %cst = arith.constant 0.000000e+00 : f32
    %20 = vector.broadcast %cst : f32 to vector<8x32x128xf32>
    %21 = arith.maximumf %19, %20 : vector<8x32x128xf32>
    %c0_12 = arith.constant 0 : index
    %c0_13 = arith.constant 0 : index
    %c0_14 = arith.constant 0 : index
    %22 = vector.load %arg4[%c0_12, %c0_13, %c0_14] : memref<8x16x32xf32, #tpu.memory_space<vmem>>, vector<8x16x32xf32>
    "tpu.trace_start"() <{level = 10 : i32, message = "jfk,jkr->jfr"}> : () -> ()
    %cst_15 = arith.constant dense<0.000000e+00> : vector<8x16x128xf32>
    %23 = tpu.matmul %22, %21, %cst_15 {dimension_numbers = #tpu.dot_dimension_numbers<[2], [1], [1], [2], [0, 0, 0, 1, 1, 2], [0], [0]>, precision = #tpu.contract_precision<fp32>} : vector<8x16x32xf32>, vector<8x32x128xf32>, vector<8x16x128xf32> -> vector<8x16x128xf32>
    "tpu.trace_stop"() : () -> ()
    %24 = vector.shape_cast %23 : vector<8x16x128xf32> to vector<128x128xf32>
    %25 = tpu.transpose %24, [1, 0] : vector<128x128xf32> -> vector<128x128xf32>
    %c0_16 = arith.constant 0 : index
    %c0_17 = arith.constant 0 : index
    %26 = vector.load %arg5[%c0_16, %c0_17] : memref<1x128xf32, #tpu.memory_space<vmem>>, vector<1x128xf32>
    %27 = vector.broadcast %26 : vector<1x128xf32> to vector<128x128xf32>
    %28 = arith.addf %25, %27 : vector<128x128xf32>
    %cst_18 = arith.constant 0.000000e+00 : f32
    %29 = vector.broadcast %cst_18 : f32 to vector<128x128xf32>
    %30 = arith.maximumf %28, %29 : vector<128x128xf32>
    %c0_19 = arith.constant 0 : index
    %c0_20 = arith.constant 0 : index
    %31 = vector.load %arg6[%c0_19, %c0_20] : memref<128x128xf32, #tpu.memory_space<vmem>>, vector<128x128xf32>
    tpu.vector_store %arg6[%c0_19, %c0_20], %30 {strides = array<i32>} : memref<128x128xf32, #tpu.memory_space<vmem>>, vector<128x128xf32>,
    return
  }
  func.func @transform_0(%arg0: i32) -> (i32, i32, i32) {
    %c0_i32 = arith.constant 0 : i32
    %c0_i32_0 = arith.constant 0 : i32
    %c0_i32_1 = arith.constant 0 : i32
    return %c0_i32, %c0_i32_0, %arg0 : i32, i32, i32
  }
  func.func @transform_1(%arg0: i32) -> (i32, i32, i32) {
    %c0_i32 = arith.constant 0 : i32
    %c0_i32_0 = arith.constant 0 : i32
    %c0_i32_1 = arith.constant 0 : i32
    return %c0_i32, %c0_i32_0, %arg0 : i32, i32, i32
  }
  func.func @transform_2(%arg0: i32) -> (i32, i32, i32) {
    %c0_i32 = arith.constant 0 : i32
    %c0_i32_0 = arith.constant 0 : i32
    %c0_i32_1 = arith.constant 0 : i32
    %c0_i32_2 = arith.constant 0 : i32
    return %c0_i32, %c0_i32_0, %c0_i32_1 : i32, i32, i32
  }
  func.func @transform_3(%arg0: i32) -> (i32, i32, i32) {
    %c0_i32 = arith.constant 0 : i32
    %c0_i32_0 = arith.constant 0 : i32
    %c0_i32_1 = arith.constant 0 : i32
    %c0_i32_2 = arith.constant 0 : i32
    return %c0_i32, %c0_i32_0, %c0_i32_1 : i32, i32, i32
  }
  func.func @transform_4(%arg0: i32) -> (i32, i32) {
    %c0_i32 = arith.constant 0 : i32
    %c0_i32_0 = arith.constant 0 : i32
    %c0_i32_1 = arith.constant 0 : i32
    return %c0_i32, %c0_i32_0 : i32, i32
  }
  func.func @transform_5(%arg0: i32) -> (i32, i32) {
    %c0_i32 = arith.constant 0 : i32
    %c0_i32_0 = arith.constant 0 : i32
    return %arg0, %c0_i32 : i32, i32
  }
}

</mosaic_0001>

<bundles_post_ra>
// kernel: tpu_custom_call.1
= control target key start
LH: loop header
LB: loop body
LE: loop exit
PB: predicated region body
PF: predicated region fallthrough
CT: control target
= control target key end

     0   :  { %10 = vsyncpa [#allocation3], 0  ;;  %s6772_s0 = inlined_call_operand.vmem [shape: f32[8,1,1], index: 0, kind: input, shape index: {}]   ;;  %s6773_s1 = inlined_call_operand.vmem [shape: f32[8,1,1], index: 1, kind: input, shape index: {}]   ;;  %s6774_s2 = inlined_call_operand.vmem [shape: f32[3,32,1], index: 2, kind: input, shape index: {}]   ;;  %s6775_s3 = inlined_call_operand.hbm [shape: f32[8,16,32], index: 3, kind: input, shape index: {}]   ;;  %s6776_s4 = inlined_call_operand.vmem [shape: f32[1,128], index: 4, kind: input, shape index: {}]   ;;  %s6777_s5 = inlined_call_operand.hbm [shape: f32[1,128], index: 5, kind: output, shape index: {}]  }
   0x1   :  { %11 = vsyncpa [#allocation4], 0  ;;  %s5668_s18 = smov [#allocation2]  }
   0x2   :  { %s23_s19 = sshll.u32 %s5668_s18, 4  ;;  %s24_s19 = int_to_ptr.vmem [resolvable:$true] %s23_s19 }
   0x3   :  { %s5632_s20 = scalar_lea.vmem %s24_s19, 2048  ;;  %p5637_p1 = scmp.lt.s32.totalorder %s24_s19, %s24_s19 }
   0x4   :  { %p5633_p0 = scmp.ne.s32.totalorder %s24_s19, %s5632_s20  ;;  %p5638_p2 = scmp.lt.s32.totalorder %s5632_s20, %s5632_s20 }
   0x6   :  { %p5639_p3 = por %p5638_p2, %p5637_p1 }
   0x8   :  { %p5640_p4 = pnand %p5639_p3, %p5633_p0 }
   0xa   :  { %5643 = shalt.err (!%p5640_p4)
}
   0xb   :  { %s5669_s21 = smov 128   ;;  %s5670_s22 = smov 8  }
   0xc   :  { %29 = dma.hbm_to_vmem [thread:$0]  %s6775_s3, 2048, %s24_s19, [#allocation3], %s5669_s21, %s5669_s21, %s5670_s22  }
   0xd   :  { %5664 = dma.done.wait [#allocation3], 2048  }
   0xe   :  { %5665 = vsyncadd [#allocation3], 4294965248  ;;  %v5671_v0 = vmov 0   ;;  %v54_v1 = vld [vmem:[%s6774_s2 + $0x18] sm:$0xff]  ;;  %v53_v2 = vld [vmem:[%s6774_s2 + $0x10] sm:$0xff]  ;;  %vm397_vm0 = vcmask 261120  }
   0xf   :  { %5623 = vset.pattern.permute.xlu1 %v5671_v0  ;;  %5622 = vset.pattern.permute.xlu0 %v5671_v0  ;;  %v4777_v3 = vld [vmem:[%s6774_s2 + $0x38] sm:$0xff]  ;;  %v4776_v4 = vld [vmem:[%s6774_s2 + $0x30] sm:$0xff]  ;;  %v4775_v5 = vld [vmem:[%s6774_s2 + $0x28] sm:$0xff] }
  0x10   :  { %130 = vperm.xlu0 %5622, %v54_v1   ;;  %125 = vperm.xlu1 %5623, %v53_v2   ;;  %v52_v6 = vld [vmem:[%s6774_s2 + $0x8] sm:$0xff]  ;;  %v4781_v7 = vld [vmem:[%s6774_s2 + $0x58] sm:$0xff]  ;;  %v51_v8 = vld [vmem:[%s6774_s2] sm:$0xff] }
  0x11   :  { %v4774_v9 = vld [vmem:[%s6774_s2 + $0x20] sm:$0xff]  ;;  %v4780_v10 = vld [vmem:[%s6774_s2 + $0x50] sm:$0xff]  ;;  %v4779_v11 = vld [vmem:[%s6774_s2 + $0x48] sm:$0xff] }
  0x12   :  { %v4778_v12 = vld [vmem:[%s6774_s2 + $0x40] sm:$0xff]  ;;  %v382_v27 = vld [vmem:[#allocation2 + $0x8] sm:$0xff] }
  0x13   :  { %v381_v13 = vld [vmem:[#allocation2] sm:$0xff]  ;;  %v5835_v41 = vsel %vm397_vm0, %v382_v27, 0 }
  0x14   :  { %230 = vperm.xlu0 %5622, %v4777_v3   ;;  %225 = vperm.xlu1 %5623, %v4776_v4   ;;  %v399_v14 = vsel %vm397_vm0, %v381_v13, 0  ;;  %v5762_v22 = vld [vmem:[%s6772_s0] ss:$0 sm:$0xff]  ;;  %v5771_v25 = vld [vmem:[%s6772_s0 + $0x2] ss:$0 sm:$0xff] }
  0x15   :  { %v5745_v15 = vand.u32 4294901760, %v399_v14  ;;  %v5776_v26 = vld [vmem:[%s6773_s1] ss:$0 sm:$0xff]  ;;  %v5781_v28 = vld [vmem:[%s6772_s0 + $0x3] ss:$0 sm:$0xff] }
  0x16   :  { %v5786_v29 = vld [vmem:[%s6772_s0 + $0x4] ss:$0 sm:$0xff]  ;;  %v5791_v30 = vld [vmem:[%s6773_s1 + $0x2] ss:$0 sm:$0xff]  ;;  %v5796_v31 = vld [vmem:[%s6773_s1 + $0x3] ss:$0 sm:$0xff] }
  0x17   :  { %v5748_v16 = vsub.f32 %v399_v14, %v5745_v15  ;;  %5106 = vmatprep.mubr.f32.mxu1 %v5745_v15  ;;  %v5801_v32 = vld [vmem:[%s6773_s1 + $0x4] ss:$0 sm:$0xff]  ;;  %v5806_v33 = vld [vmem:[%s6773_s1 + $0x5] ss:$0 sm:$0xff]  ;;  %v5811_v34 = vld [vmem:[%s6773_s1 + $0x6] ss:$0 sm:$0xff] }
  0x18   :  { %220 = vperm.xlu1 %5623, %v4775_v5   ;;  %120 = vperm.xlu0 %5622, %v52_v6   ;;  %v5816_v35 = vld [vmem:[%s6773_s1 + $0x7] ss:$0 sm:$0xff]  ;;  %v5821_v36 = vld [vmem:[%s6772_s0 + $0x5] ss:$0 sm:$0xff]  ;;  %v5826_v37 = vld [vmem:[%s6772_s0 + $0x6] ss:$0 sm:$0xff] }
  0x19   :  { %v6778_v17 = vand.u32 4294901760, %v5748_v16  ;;  %v5840_v42 = vld [vmem:[%s6772_s0 + $0x7] ss:$0 sm:$0xff] }
  0x1b   :  { %v476_v18 = vsub.f32 %v5748_v16, %v6778_v17 }
  0x1c   :  { %314 = vperm.xlu0 %5622, %v4781_v7   ;;  %115 = vperm.xlu1 %5623, %v51_v8  }
  0x1d   :  { %v477_v19 = vand.u32 4294901760, %v476_v18 }
  0x1f   :  { %5095 = vmatprep.mubr.f32.mxu0 %v477_v19 }
  0x20   :  { %215 = vperm.xlu0 %5622, %v4774_v9   ;;  %309 = vperm.xlu1 %5623, %v4780_v10  }
  0x24   :  { %304 = vperm.xlu0 %5622, %v4779_v11   ;;  %299 = vperm.xlu1 %5623, %v4778_v12  }
  0x8b   :  { %v5755_v20 = vpop.permute.xlu0 %130  ;;  %v5757_v21 = vpop.permute.xlu1 %125 }
  0x8c   :  { %v136_v38 = vmul.f32 %v5762_v22, %v5755_v20  ;;  %v144_v43 = vmul.f32 %v5771_v25, %v5755_v20  ;;  %v148_v51 = vmul.f32 %v5781_v28, %v5755_v20  ;;  %v152_v52 = vmul.f32 %v5786_v29, %v5755_v20 }
  0x8d   :  { %v156_v53 = vmul.f32 %v5821_v36, %v5755_v20  ;;  %v160_v54 = vmul.f32 %v5826_v37, %v5755_v20  ;;  %v164_v55 = vmul.f32 %v5840_v42, %v5755_v20  ;;  %v135_v56 = vmul.f32 %v5762_v22, %v5757_v21 }
  0x8e   :  { %v143_v57 = vmul.f32 %v5771_v25, %v5757_v21  ;;  %v147_v58 = vmul.f32 %v5781_v28, %v5757_v21  ;;  %v151_v60 = vmul.f32 %v5786_v29, %v5757_v21  ;;  %v155_v5 = vmul.f32 %v5821_v36, %v5757_v21 }
  0x8f   :  { %v5764_v23 = vpop.permute.xlu0 %230  ;;  %v5766_v24 = vpop.permute.xlu1 %225 }
  0x90   :  { %v236_v44 = vmul.f32 %v5776_v26, %v5764_v23  ;;  %v244_v45 = vmul.f32 %v5791_v30, %v5764_v23  ;;  %v248_v46 = vmul.f32 %v5796_v31, %v5764_v23  ;;  %v252_v47 = vmul.f32 %v5801_v32, %v5764_v23 }
  0x91   :  { %v256_v48 = vmul.f32 %v5806_v33, %v5764_v23  ;;  %v260_v49 = vmul.f32 %v5811_v34, %v5764_v23  ;;  %v264_v50 = vmul.f32 %v5816_v35, %v5764_v23  ;;  %v235_v13 = vmul.f32 %v5776_v26, %v5766_v24 }
  0x92   :  { %v268_v61 = vadd.f32 %v236_v44, %v136_v38  ;;  %v276_v62 = vadd.f32 %v244_v45, %v144_v43  ;;  %v280_v63 = vadd.f32 %v248_v46, %v148_v51  ;;  %v284_v0 = vadd.f32 %v252_v47, %v152_v52 }
  0x93   :  { %v5830_v39 = vpop.permute.xlu1 %220  ;;  %v5832_v40 = vpop.permute.xlu0 %120  ;;  %v288_v1 = vadd.f32 %v256_v48, %v156_v53  ;;  %v292_v2 = vadd.f32 %v260_v49, %v160_v54  ;;  %v296_v3 = vadd.f32 %v264_v50, %v164_v55  ;;  %v243_v14 = vmul.f32 %v5791_v30, %v5766_v24 }
  0x94   :  { %v247_v18 = vmul.f32 %v5796_v31, %v5766_v24  ;;  %v251_v27 = vmul.f32 %v5801_v32, %v5766_v24  ;;  %v255_v38 = vmul.f32 %v5806_v33, %v5766_v24  ;;  %v259_v43 = vmul.f32 %v5811_v34, %v5766_v24 }
  0x95   :  { %v263_v44 = vmul.f32 %v5816_v35, %v5766_v24  ;;  %v159_v45 = vmul.f32 %v5826_v37, %v5757_v21  ;;  %v163_v46 = vmul.f32 %v5840_v42, %v5757_v21  ;;  %v234_v47 = vmul.f32 %v5776_v26, %v5830_v39 }
  0x96   :  { %v242_v49 = vmul.f32 %v5791_v30, %v5830_v39  ;;  %v246_v50 = vmul.f32 %v5796_v31, %v5830_v39  ;;  %v250_v51 = vmul.f32 %v5801_v32, %v5830_v39  ;;  %v254_v52 = vmul.f32 %v5806_v33, %v5830_v39 }
  0x97   :  { %v5874_v59 = vpop.permute.xlu0 %314  ;;  %v5878_v4 = vpop.permute.xlu1 %115  ;;  %v258_v54 = vmul.f32 %v5811_v34, %v5830_v39  ;;  %v267_v55 = vadd.f32 %v235_v13, %v135_v56  ;;  %v262_v17 = vmul.f32 %v5816_v35, %v5830_v39 }
  0x98   :  { %v5883_v6 = vadd.f32 %v5874_v59, %v268_v61  ;;  %v5886_v7 = vadd.f32 %v5874_v59, %v276_v62  ;;  %v5889_v8 = vadd.f32 %v5874_v59, %v280_v63  ;;  %v5892_v9 = vadd.f32 %v5874_v59, %v284_v0 }
  0x99   :  { %v5895_v10 = vadd.f32 %v5874_v59, %v288_v1  ;;  %v5898_v11 = vadd.f32 %v5874_v59, %v292_v2  ;;  %v5901_v12 = vadd.f32 %v5874_v59, %v296_v3  ;;  %v275_v61 = vadd.f32 %v243_v14, %v143_v57 }
  0x9a   :  { %v6779_v19 = vmax.f32 %v5883_v6, 0.0  ;;  %v279_v62 = vadd.f32 %v247_v18, %v147_v58  ;;  %v283_v0 = vadd.f32 %v251_v27, %v151_v60  ;;  %v287_v1 = vadd.f32 %v255_v38, %v155_v5 }
  0x9b   :  { %6780 = vst [vmem:[#allocation8_spill] sm:$0xff] %v5901_v12  ;;  %v5936_v53 = vpop.permute.xlu1 %309  ;;  %v5941_v63 = vpop.permute.xlu0 %215  ;;  %v291_v2 = vadd.f32 %v259_v43, %v159_v45  ;;  %v295_v3 = vadd.f32 %v263_v44, %v163_v46  ;;  %v134_v14 = vmul.f32 %v5762_v22, %v5832_v40  ;;  %v142_v18 = vmul.f32 %v5771_v25, %v5832_v40 }
  0x9c   :  { %v5926_v48 = vand.u32 4294901760, %v6779_v19  ;;  %v5947_v19 = vadd.f32 %v5936_v53, %v267_v55  ;;  %v5950_v56 = vadd.f32 %v5936_v53, %v275_v61  ;;  %v5953_v57 = vadd.f32 %v5936_v53, %v279_v62 }
  0x9d   :  { %v5956_v58 = vadd.f32 %v5936_v53, %v283_v0  ;;  %v5959_v60 = vadd.f32 %v5936_v53, %v287_v1  ;;  %v5962_v5 = vadd.f32 %v5936_v53, %v291_v2  ;;  %v5965_v13 = vadd.f32 %v5936_v53, %v295_v3 }
  0x9e   :  { %5087 = vmatprep.subr.mxu0 %v5926_v48  ;;  %v146_v27 = vmul.f32 %v5781_v28, %v5832_v40  ;;  %v351_v38 = vmax.f32 %v5947_v19, 0.0  ;;  %v150_v43 = vmul.f32 %v5786_v29, %v5832_v40  ;;  %v154_v44 = vmul.f32 %v5821_v36, %v5832_v40 }
  0x9f   :  { %5088 = vmatpush3.msra.mxu0 %v5926_v48  ;;  %6781 = vst [vmem:[#allocation9_spill] sm:$0xff] %v5965_v13  ;;  %v158_v45 = vmul.f32 %v5826_v37, %v5832_v40  ;;  %v162_v46 = vmul.f32 %v5840_v42, %v5832_v40  ;;  %v5984_v61 = vpop.permute.xlu0 %304  ;;  %v266_v62 = vadd.f32 %v234_v47, %v134_v14  ;;  %v5992_v1 = vand.u32 4294901760, %v5835_v41 }
  0xa0   :  { %v5982_v55 = vand.u32 4294901760, %v351_v38  ;;  %v5986_v0 = vadd.f32 %v242_v49, %v142_v18  ;;  %v5988_v19 = vadd.f32 %v246_v50, %v146_v27  ;;  %v5994_v2 = vadd.f32 %v250_v51, %v150_v43  ;;  %v6033_v43 = vpop.permute.xlu1 %299 }
  0xa1   :  { %v5996_v3 = vadd.f32 %v254_v52, %v154_v44  ;;  %v5998_v13 = vadd.f32 %v258_v54, %v158_v45  ;;  %v6000_v12 = vadd.f32 %v262_v17, %v162_v46  ;;  %v318_v47 = vadd.f32 %v5984_v61, %v266_v62 }
  0xa2   :  { %5089 = vmatprep.subr.mxu0 %v5982_v55  ;;  %v6006_v50 = vsub.f32 %v5835_v41, %v5992_v1  ;;  %v133_v51 = vmul.f32 %v5762_v22, %v5878_v4  ;;  %v141_v52 = vmul.f32 %v5771_v25, %v5878_v4  ;;  %v145_v54 = vmul.f32 %v5781_v28, %v5878_v4 }
  0xa3   :  { %6782 = vst [vmem:[#allocation10_spill] sm:$0xff] %v6000_v12  ;;  %5090 = vmatpush3.msra.mxu0 %v5982_v55  ;;  %v350_v49 = vmax.f32 %v318_v47, 0.0  ;;  %v149_v18 = vmul.f32 %v5786_v29, %v5878_v4  ;;  %v153_v41 = vmul.f32 %v5821_v36, %v5878_v4  ;;  %v157_v27 = vmul.f32 %v5826_v37, %v5878_v4 }
  0xa4   :  { %v161_v22 = vmul.f32 %v5840_v42, %v5878_v4  ;;  %v233_v25 = vmul.f32 %v5776_v26, %v5941_v63  ;;  %v241_v28 = vmul.f32 %v5791_v30, %v5941_v63  ;;  %v245_v29 = vmul.f32 %v5796_v31, %v5941_v63 }
  0xa5   :  { %v6008_v14 = vand.u32 4294901760, %v350_v49  ;;  %v249_v36 = vmul.f32 %v5801_v32, %v5941_v63  ;;  %v253_v37 = vmul.f32 %v5806_v33, %v5941_v63  ;;  %v257_v42 = vmul.f32 %v5811_v34, %v5941_v63 }
  0xa6   :  { %v261_v26 = vmul.f32 %v5816_v35, %v5941_v63  ;;  %v265_v44 = vadd.f32 %v233_v25, %v133_v51  ;;  %v6043_v45 = vadd.f32 %v241_v28, %v141_v52  ;;  %v277_v30 = vadd.f32 %v245_v29, %v145_v54 }
  0xa7   :  { %5091 = vmatprep.subr.mxu0 %v6008_v14  ;;  %v281_v46 = vadd.f32 %v249_v36, %v149_v18  ;;  %v285_v31 = vadd.f32 %v253_v37, %v153_v41  ;;  %v289_v62 = vadd.f32 %v257_v42, %v157_v27  ;;  %v6783_v33 = vand.u32 4294901760, %v6006_v50  ;;  %v4791_v18 = vld [vmem:[%s6773_s1 + $0x1] ss:$0 sm:$0xff] }
  0xa8   :  { %5092 = vmatpush3.msra.mxu0 %v6008_v14  ;;  %v293_v47 = vadd.f32 %v261_v26, %v161_v22  ;;  %v317_v17 = vadd.f32 %v6033_v43, %v265_v44  ;;  %v6047_v32 = vadd.f32 %v6033_v43, %v277_v30  ;;  %v4783_v22 = vld [vmem:[%s6772_s0 + $0x1] ss:$0 sm:$0xff]  ;;  %v6785_v25 = vmax.f32 %v5883_v6, 0.0 }
  0xa9   :  { %v486_v34 = vsub.f32 %v6006_v50, %v6783_v33  ;;  %v6053_v12 = vadd.f32 %v6033_v43, %v281_v46  ;;  %v6056_v35 = vadd.f32 %v6033_v43, %v285_v31  ;;  %v6059_v51 = vadd.f32 %v6033_v43, %v289_v62 }
  0xaa   :  { %v6062_v52 = vadd.f32 %v6033_v43, %v293_v47  ;;  %v349_v54 = vmax.f32 %v317_v17, 0.0  ;;  %v519_v28 = vsub.f32 %v6785_v25, %v5926_v48  ;;  %v526_v29 = vsub.f32 %v351_v38, %v5982_v55 }
  0xab   :  { %v487_v27 = vand.u32 4294901760, %v486_v34  ;;  %v533_v17 = vsub.f32 %v350_v49, %v6008_v14  ;;  %v240_v37 = vmul.f32 %v4791_v18, %v5764_v23  ;;  %v140_v6 = vmul.f32 %v4783_v22, %v5755_v20 }
  0xac   :  { %6784 = vst [vmem:[#allocation11_spill] sm:$0xff] %v6062_v52  ;;  %v6067_v41 = vand.u32 4294901760, %v349_v54  ;;  %v520_v42 = vand.u32 4294901760, %v519_v28  ;;  %v527_v26 = vand.u32 4294901760, %v526_v29  ;;  %v239_v30 = vmul.f32 %v4791_v18, %v5766_v24 }
  0xad   :  { %v534_v44 = vand.u32 4294901760, %v533_v17  ;;  %v139_v23 = vmul.f32 %v4783_v22, %v5757_v21  ;;  %v238_v62 = vmul.f32 %v4791_v18, %v5830_v39  ;;  %v272_v47 = vadd.f32 %v240_v37, %v140_v6  ;;  %v384_v39 = vld [vmem:[#allocation2 + $0x18] sm:$0xff] }
  0xae   :  { %5093 = vmatprep.subr.mxu0 %v6067_v41  ;;  %v540_v36 = vsub.f32 %v349_v54, %v6067_v41  ;;  %v521_v38 = vsub.f32 %v519_v28, %v520_v42  ;;  %v528_v49 = vsub.f32 %v526_v29, %v527_v26  ;;  %v138_v33 = vmul.f32 %v4783_v22, %v5832_v40 }
  0xaf   :  { %5094 = vmatpush3.msra.mxu0 %v6067_v41  ;;  %v535_v46 = vsub.f32 %v533_v17, %v534_v44  ;;  %v237_v20 = vmul.f32 %v4791_v18, %v5941_v63  ;;  %v324_v54 = vadd.f32 %v5874_v59, %v272_v47  ;;  %v271_v25 = vadd.f32 %v239_v30, %v139_v23 }
  0xb0   :  { %5109 = vmatprep.subr.mxu0 %v519_v28  ;;  %5096 = vmatmul.mubr.f32.vlgmr.msra.gmra.mxu0 %v487_v27  ;;  %v541_v31 = vand.u32 4294901760, %v540_v36  ;;  %v522_v34 = vand.u32 4294901760, %v521_v38  ;;  %v529_v24 = vand.u32 4294901760, %v528_v49  ;;  %v383_v27 = vld [vmem:[#allocation2 + $0x10] sm:$0xff]  ;;  %v270_v63 = vadd.f32 %v238_v62, %v138_v33 }
  0xb1   :  { %5110 = vmatpush3.msra.mxu0 %v519_v28  ;;  %5117 = vmatprep.mubr.f32.mxu0 %v5748_v16  ;;  %v137_v28 = vmul.f32 %v4783_v22, %v5878_v4  ;;  %v536_v21 = vand.u32 4294901760, %v535_v46  ;;  %v323_v40 = vadd.f32 %v5936_v53, %v271_v25  ;;  %v933_v59 = vsel %vm397_vm0, %v383_v27, 0 }
  0xb2   :  { %5111 = vmatprep.subr.mxu0 %v526_v29  ;;  %5098 = vmatprep.subr.mxu1 %v522_v34  ;;  %v542_v52 = vsub.f32 %v540_v36, %v541_v31  ;;  %v936_v4 = vsel %vm397_vm0, %v384_v39, 0  ;;  %v322_v22 = vadd.f32 %v5984_v61, %v270_v63  ;;  %v6095_v53 = vand.u32 4294901760, %v933_v59 }
  0xb3   :  { %5112 = vmatpush3.msra.mxu0 %v526_v29  ;;  %5099 = vmatpush3.msra.mxu1 %v522_v34  ;;  %v269_v18 = vadd.f32 %v237_v20, %v137_v28  ;;  %v356_v29 = vmax.f32 %v324_v54, 0.0  ;;  %v6098_v6 = vand.u32 4294901760, %v936_v4  ;;  %v6786_v46 = vand.u32 4294901760, %v5748_v16 }
  0xb4   :  { %5113 = vmatprep.subr.mxu0 %v533_v17  ;;  %5100 = vmatprep.subr.mxu1 %v529_v24  ;;  %v354_v38 = vmax.f32 %v322_v22, 0.0  ;;  %v6787_v20 = vand.u32 4294901760, %v6006_v50 }
  0xb5   :  { %5114 = vmatpush3.msra.mxu0 %v533_v17  ;;  %5101 = vmatpush3.msra.mxu1 %v529_v24  ;;  %v543_v17 = vand.u32 4294901760, %v542_v52  ;;  %v321_v37 = vadd.f32 %v6033_v43, %v269_v18  ;;  %v6100_v30 = vand.u32 4294901760, %v356_v29  ;;  %v6106_v52 = vsub.f32 %v933_v59, %v6095_v53  ;;  %v386_v59 = vld [vmem:[#allocation2 + $0x28] sm:$0xff] }
  0xb6   :  { %5115 = vmatprep.subr.mxu0 %v540_v36  ;;  %5102 = vmatprep.subr.mxu1 %v536_v21  ;;  %v6112_v49 = vsub.f32 %v936_v4, %v6098_v6  ;;  %v360_v4 = vmax.f32 %v5886_v7, 0.0  ;;  %v1470_v22 = vsel %vm397_vm0, %v386_v59, 0  ;;  %v325_v7 = vadd.f32 %v6033_v43, %v6043_v45 }
  0xb7   :  { %5116 = vmatpush3.msra.mxu0 %v540_v36  ;;  %5103 = vmatpush3.msra.mxu1 %v536_v21  ;;  %v355_v36 = vmax.f32 %v323_v40, 0.0  ;;  %v1053_v23 = vsub.f32 %v356_v29, %v6100_v30  ;;  %v1009_v62 = vand.u32 4294901760, %v6106_v52 }
  0xb8   :  { %5131 = vmatprep.subr.mxu0 %v520_v42  ;;  %5118 = vmatmul.mubr.f32.vlgmr.msra.gmra.mxu0 %v6006_v50  ;;  %v1019_v16 = vand.u32 4294901760, %v6112_v49  ;;  %v357_v45 = vmax.f32 %v325_v7, 0.0 }
  0xb9   :  { %5132 = vmatpush3.msra.mxu0 %v520_v42  ;;  %5104 = vmatprep.subr.mxu1 %v543_v17  ;;  %v6108_v42 = vand.u32 4294901760, %v355_v36  ;;  %v1010_v24 = vsub.f32 %v6106_v52, %v1009_v62 }
  0xba   :  { %5133 = vmatprep.subr.mxu0 %v527_v26  ;;  %5105 = vmatpush3.msra.mxu1 %v543_v17  ;;  %v1020_v50 = vsub.f32 %v6112_v49, %v1019_v16  ;;  %v326_v17 = vadd.f32 %v5984_v61, %v5986_v0  ;;  %v6189_v0 = vand.u32 4294901760, %v360_v4 }
  0xbb   :  { %5134 = vmatpush3.msra.mxu0 %v527_v26  ;;  %5107 = vmatmul.mubr.f32.vlgmr.msra.gmra.mxu1 %v5992_v1  ;;  %v353_v26 = vmax.f32 %v321_v37, 0.0  ;;  %v1060_v33 = vsub.f32 %v355_v36, %v6108_v42  ;;  %v1011_v28 = vand.u32 4294901760, %v1010_v24  ;;  %v359_v37 = vmax.f32 %v5950_v56, 0.0 }
  0xbc   :  { %5135 = vmatprep.subr.mxu0 %v534_v44  ;;  %5120 = vmatprep.subr.mxu1 %v5926_v48 }
  0xbd   :  { %5121 = vmatpush3.msra.mxu1 %v5926_v48  ;;  %5136 = vmatpush3.msra.mxu0 %v534_v44  ;;  %v6118_v44 = vand.u32 4294901760, %v354_v38  ;;  %v6124_v47 = vand.u32 4294901760, %v353_v26  ;;  %v6148_v54 = vand.u32 4294901760, %v1060_v33  ;;  %v6200_v43 = vand.u32 4294901760, %v359_v37 }
  0xbe   :  { %5122 = vmatprep.subr.mxu1 %v5982_v55  ;;  %5137 = vmatprep.subr.mxu0 %v541_v31 }
  0xbf   :  { %5123 = vmatpush3.msra.mxu1 %v5982_v55  ;;  %5128 = vmatprep.mubr.f32.mxu1 %v6786_v46  ;;  %v1067_v34 = vsub.f32 %v354_v38, %v6118_v44  ;;  %v1074_v27 = vsub.f32 %v353_v26, %v6124_v47  ;;  %v1062_v21 = vsub.f32 %v1060_v33, %v6148_v54  ;;  %v6187_v38 = vand.u32 4294901760, %v1470_v22 }
  0xc0   :  { %5124 = vmatprep.subr.mxu1 %v6008_v14  ;;  %5138 = vmatpush3.msra.mxu0 %v541_v31  ;;  %v6132_v31 = vand.u32 4294901760, %v1053_v23  ;;  %v358_v26 = vmax.f32 %v326_v17, 0.0  ;;  %v1594_v24 = vsub.f32 %v359_v37, %v6200_v43 }
  0xc1   :  { %5125 = vmatpush3.msra.mxu1 %v6008_v14  ;;  %5139 = vmatprep.mubr.f32.mxu0 %v5745_v15  ;;  %v6156_v25 = vand.u32 4294901760, %v1067_v34  ;;  %v6163_v39 = vand.u32 4294901760, %v1074_v27  ;;  %v1063_v63 = vand.u32 4294901760, %v1062_v21  ;;  %v6205_v46 = vsub.f32 %v1470_v22, %v6187_v38 }
  0xc2   :  { %5126 = vmatprep.subr.mxu1 %v6067_v41  ;;  %5153 = vmatprep.subr.mxu0 %v6100_v30 }
  0xc3   :  { %5127 = vmatpush3.msra.mxu1 %v6067_v41  ;;  %5140 = vmatmul.mubr.f32.vlgmr.msra.gmra.mxu0 %v5992_v1  ;;  %v1076_v18 = vsub.f32 %v1074_v27, %v6163_v39 }
  0xc4   :  { %5129 = vmatmul.mubr.f32.vlgmr.msra.gmra.mxu1 %v6787_v20  ;;  %5142 = vmatprep.subr.mxu1 %v5926_v48  ;;  %v6218_v20 = vand.u32 4294901760, %v357_v45 }
  0xc5   :  { %5143 = vmatpush3.msra.mxu1 %v5926_v48  ;;  %5154 = vmatpush3.msra.mxu0 %v6100_v30  ;;  %v1055_v48 = vsub.f32 %v1053_v23, %v6132_v31 }
  0xc6   :  { %5144 = vmatprep.subr.mxu1 %v5982_v55  ;;  %5155 = vmatprep.subr.mxu0 %v6108_v42 }
  0xc7   :  { %5145 = vmatpush3.msra.mxu1 %v5982_v55  ;;  %5156 = vmatpush3.msra.mxu0 %v6108_v42  ;;  %v1021_v55 = vand.u32 4294901760, %v1020_v50  ;;  %v1056_v40 = vand.u32 4294901760, %v1055_v48 }
  0xc8   :  { %5146 = vmatprep.subr.mxu1 %v6008_v14  ;;  %5157 = vmatprep.subr.mxu0 %v6118_v44 }
  0xc9   :  { %5147 = vmatpush3.msra.mxu1 %v6008_v14  ;;  %5158 = vmatpush3.msra.mxu0 %v6118_v44  ;;  %v1069_v14 = vsub.f32 %v1067_v34, %v6156_v25 }
  0xca   :  { %5148 = vmatprep.subr.mxu1 %v6067_v41  ;;  %5159 = vmatprep.subr.mxu0 %v6124_v47 }
  0xcb   :  { %5149 = vmatpush3.msra.mxu1 %v6067_v41  ;;  %5150 = vmatprep.mubr.f32.mxu1 %v5745_v15  ;;  %v1070_v41 = vand.u32 4294901760, %v1069_v14  ;;  %v385_v15 = vld [vmem:[#allocation2 + $0x20] sm:$0xff] }
  0xcc   :  { %5160 = vmatpush3.msra.mxu0 %v6124_v47  ;;  %5151 = vmatmul.mubr.f32.vlgmr.msra.gmra.mxu1 %v5992_v1  ;;  %v1077_v1 = vand.u32 4294901760, %v1076_v18  ;;  %v1467_v29 = vsel %vm397_vm0, %v385_v15, 0 }
  0xcd   :  { %5161 = vmatprep.mubr.f32.mxu0 %v1011_v28  ;;  %5164 = vmatprep.subr.mxu1 %v1056_v40  ;;  %v6180_v36 = vand.u32 4294901760, %v1467_v29 }
  0xce   :  { %5175 = vmatprep.subr.mxu0 %v1053_v23  ;;  %5162 = vmatmul.mubr.f32.vlgmr.msra.gmra.mxu0 %v1021_v55 }
  0xcf   :  { %5165 = vmatpush3.msra.mxu1 %v1056_v40  ;;  %5176 = vmatpush3.msra.mxu0 %v1053_v23  ;;  %v6198_v56 = vsub.f32 %v1467_v29, %v6180_v36  ;;  %v1587_v23 = vsub.f32 %v360_v4, %v6189_v0  ;;  %v388_v40 = vld [vmem:[#allocation2 + $0x38] sm:$0xff]  ;;  %v361_v4 = vmax.f32 %v6047_v32, 0.0 }
  0xd0   :  { %5166 = vmatprep.subr.mxu1 %v1063_v63  ;;  %5177 = vmatprep.subr.mxu0 %v1060_v33  ;;  %v2004_v18 = vsel %vm397_vm0, %v388_v40, 0 }
  0xd1   :  { %5167 = vmatpush3.msra.mxu1 %v1063_v63  ;;  %5178 = vmatpush3.msra.mxu0 %v1060_v33  ;;  %v6210_v33 = vand.u32 4294901760, %v358_v26  ;;  %v6227_v50 = vand.u32 4294901760, %v1587_v23  ;;  %v364_v63 = vmax.f32 %v5889_v8, 0.0  ;;  %v6279_v8 = vand.u32 4294901760, %v2004_v18 }
  0xd2   :  { %5168 = vmatprep.subr.mxu1 %v1070_v41  ;;  %5179 = vmatprep.subr.mxu0 %v1067_v34  ;;  %v6311_v7 = vand.u32 4294901760, %v361_v4 }
  0xd3   :  { %5169 = vmatpush3.msra.mxu1 %v1070_v41  ;;  %5180 = vmatpush3.msra.mxu0 %v1067_v34  ;;  %v1553_v34 = vand.u32 4294901760, %v6205_v46  ;;  %v330_v41 = vadd.f32 %v5984_v61, %v5988_v19  ;;  %v6281_v59 = vand.u32 4294901760, %v364_v63  ;;  %v6298_v22 = vsub.f32 %v2004_v18, %v6279_v8 }
  0xd4   :  { %5170 = vmatprep.subr.mxu1 %v1077_v1  ;;  %5181 = vmatprep.subr.mxu0 %v1074_v27 }
  0xd5   :  { %5171 = vmatpush3.msra.mxu1 %v1077_v1  ;;  %5172 = vmatprep.mubr.f32.mxu1 %v6095_v53  ;;  %v363_v1 = vmax.f32 %v5953_v57, 0.0  ;;  %v362_v19 = vmax.f32 %v330_v41, 0.0  ;;  %v2121_v17 = vsub.f32 %v364_v63, %v6281_v59 }
  0xd6   :  { %5182 = vmatpush3.msra.mxu0 %v1074_v27  ;;  %5173 = vmatmul.mubr.f32.vlgmr.msra.gmra.mxu1 %v6098_v6 }
  0xd7   :  { %5183 = vmatprep.mubr.f32.mxu0 %v6106_v52  ;;  %5186 = vmatprep.subr.mxu1 %v6100_v30  ;;  %v1601_v52 = vsub.f32 %v358_v26, %v6210_v33  ;;  %v6292_v29 = vand.u32 4294901760, %v363_v1  ;;  %v6303_v37 = vand.u32 4294901760, %v362_v19  ;;  %v2087_v26 = vand.u32 4294901760, %v6298_v22 }
  0xd8   :  { %5197 = vmatprep.subr.mxu0 %v6132_v31  ;;  %5184 = vmatmul.mubr.f32.vlgmr.msra.gmra.mxu0 %v6112_v49 }
  0xd9   :  { %5187 = vmatpush3.msra.mxu1 %v6100_v30  ;;  %5198 = vmatpush3.msra.mxu0 %v6132_v31  ;;  %v1543_v31 = vand.u32 4294901760, %v6198_v56  ;;  %v6250_v27 = vand.u32 4294901760, %v1601_v52 }
  0xda   :  { %5188 = vmatprep.subr.mxu1 %v6108_v42  ;;  %5199 = vmatprep.subr.mxu0 %v6148_v54 }
  0xdb   :  { %5189 = vmatpush3.msra.mxu1 %v6108_v42  ;;  %5200 = vmatpush3.msra.mxu0 %v6148_v54  ;;  %v1544_v49 = vsub.f32 %v6198_v56, %v1543_v31  ;;  %v1608_v54 = vsub.f32 %v357_v45, %v6218_v20  ;;  %v2128_v45 = vsub.f32 %v363_v1, %v6292_v29 }
  0xdc   :  { %5190 = vmatprep.subr.mxu1 %v6118_v44  ;;  %5201 = vmatprep.subr.mxu0 %v6156_v25 }
  0xdd   :  { %5191 = vmatpush3.msra.mxu1 %v6118_v44  ;;  %5202 = vmatpush3.msra.mxu0 %v6156_v25  ;;  %v1545_v48 = vand.u32 4294901760, %v1544_v49  ;;  %v6257_v28 = vand.u32 4294901760, %v1608_v54 }
  0xde   :  { %5192 = vmatprep.subr.mxu1 %v6124_v47  ;;  %5203 = vmatprep.subr.mxu0 %v6163_v39 }
  0xdf   :  { %5193 = vmatpush3.msra.mxu1 %v6124_v47  ;;  %5194 = vmatprep.mubr.f32.mxu1 %v1009_v62  ;;  %v1554_v62 = vsub.f32 %v6205_v46, %v1553_v34 }
  0xe0   :  { %5204 = vmatpush3.msra.mxu0 %v6163_v39  ;;  %5195 = vmatmul.mubr.f32.vlgmr.msra.gmra.mxu1 %v1019_v16  ;;  %v6242_v16 = vand.u32 4294901760, %v1594_v24  ;;  %v1610_v39 = vsub.f32 %v1608_v54, %v6257_v28 }
  0xe1   :  { %5205 = vmatprep.mubr.f32.mxu0 %v6095_v53  ;;  %5208 = vmatprep.subr.mxu1 %v6100_v30 }
  0xe2   :  { %5219 = vmatprep.subr.mxu0 %v6189_v0  ;;  %5206 = vmatmul.mubr.f32.vlgmr.msra.gmra.mxu0 %v6098_v6  ;;  %v1596_v25 = vsub.f32 %v1594_v24, %v6242_v16 }
  0xe3   :  { %5209 = vmatpush3.msra.mxu1 %v6100_v30  ;;  %5220 = vmatpush3.msra.mxu0 %v6189_v0  ;;  %v1589_v30 = vsub.f32 %v1587_v23, %v6227_v50 }
  0xe4   :  { %5210 = vmatprep.subr.mxu1 %v6108_v42  ;;  %5221 = vmatprep.subr.mxu0 %v6200_v43  ;;  %v1597_v21 = vand.u32 4294901760, %v1596_v25 }
  0xe5   :  { %5211 = vmatpush3.msra.mxu1 %v6108_v42  ;;  %5222 = vmatpush3.msra.mxu0 %v6200_v43  ;;  %v1555_v42 = vand.u32 4294901760, %v1554_v62  ;;  %v1590_v55 = vand.u32 4294901760, %v1589_v30 }
  0xe6   :  { %5212 = vmatprep.subr.mxu1 %v6118_v44  ;;  %5223 = vmatprep.subr.mxu0 %v6210_v33 }
  0xe7   :  { %5213 = vmatpush3.msra.mxu1 %v6118_v44  ;;  %5224 = vmatpush3.msra.mxu0 %v6210_v33  ;;  %v1603_v44 = vsub.f32 %v1601_v52, %v6250_v27 }
  0xe8   :  { %5214 = vmatprep.subr.mxu1 %v6124_v47  ;;  %5225 = vmatprep.subr.mxu0 %v6218_v20 }
  0xe9   :  { %5215 = vmatpush3.msra.mxu1 %v6124_v47  ;;  %5216 = vmatprep.mubr.f32.mxu1 %v6095_v53  ;;  %v1604_v47 = vand.u32 4294901760, %v1603_v44  ;;  %v387_v53 = vld [vmem:[#allocation2 + $0x30] sm:$0xff]  ;;  %v367_v44 = vmax.f32 %v5956_v58, 0.0 }
  0xea   :  { %5226 = vmatpush3.msra.mxu0 %v6218_v20  ;;  %5217 = vmatmul.mubr.f32.vlgmr.msra.gmra.mxu1 %v6098_v6  ;;  %v1611_v6 = vand.u32 4294901760, %v1610_v39  ;;  %v2001_v14 = vsel %vm397_vm0, %v387_v53, 0 }
  0xeb   :  { %5227 = vmatprep.mubr.f32.mxu0 %v1545_v48  ;;  %5230 = vmatprep.subr.mxu1 %v1590_v55  ;;  %v6274_v15 = vand.u32 4294901760, %v2001_v14  ;;  %v6385_v39 = vand.u32 4294901760, %v367_v44 }
  0xec   :  { %5241 = vmatprep.subr.mxu0 %v1587_v23  ;;  %5228 = vmatmul.mubr.f32.vlgmr.msra.gmra.mxu0 %v1555_v42  ;;  %v368_v42 = vmax.f32 %v5892_v9, 0.0 }
  0xed   :  { %5231 = vmatpush3.msra.mxu1 %v1590_v55  ;;  %5242 = vmatpush3.msra.mxu0 %v1587_v23  ;;  %v6290_v57 = vsub.f32 %v2001_v14, %v6274_v15  ;;  %v6320_v23 = vand.u32 4294901760, %v2121_v17  ;;  %v2662_v18 = vsub.f32 %v367_v44, %v6385_v39 }
  0xee   :  { %5232 = vmatprep.subr.mxu1 %v1597_v21  ;;  %5243 = vmatprep.subr.mxu0 %v1594_v24 }
  0xef   :  { %5233 = vmatpush3.msra.mxu1 %v1597_v21  ;;  %5244 = vmatpush3.msra.mxu0 %v1594_v24  ;;  %v2077_v32 = vand.u32 4294901760, %v6290_v57  ;;  %v2142_v24 = vsub.f32 %v361_v4, %v6311_v7  ;;  %v6374_v21 = vand.u32 4294901760, %v368_v42  ;;  %v6428_v4 = vand.u32 4294901760, %v2662_v18 }
  0xf0   :  { %5234 = vmatprep.subr.mxu1 %v1604_v47  ;;  %5245 = vmatprep.subr.mxu0 %v1601_v52 }
  0xf1   :  { %5235 = vmatpush3.msra.mxu1 %v1604_v47  ;;  %5246 = vmatpush3.msra.mxu0 %v1601_v52  ;;  %v6350_v62 = vand.u32 4294901760, %v2142_v24  ;;  %v365_v47 = vmax.f32 %v6053_v12, 0.0 }
  0xf2   :  { %5236 = vmatprep.subr.mxu1 %v1611_v6  ;;  %5247 = vmatprep.subr.mxu0 %v1608_v54 }
  0xf3   :  { %5237 = vmatpush3.msra.mxu1 %v1611_v6  ;;  %5238 = vmatprep.mubr.f32.mxu1 %v6180_v36  ;;  %v2144_v30 = vsub.f32 %v2142_v24, %v6350_v62  ;;  %v2655_v6 = vsub.f32 %v368_v42, %v6374_v21  ;;  %v6404_v14 = vand.u32 4294901760, %v365_v47 }
  0xf4   :  { %5248 = vmatpush3.msra.mxu0 %v1608_v54  ;;  %5239 = vmatmul.mubr.f32.vlgmr.msra.gmra.mxu1 %v6187_v38 }
  0xf5   :  { %5249 = vmatprep.mubr.f32.mxu0 %v6198_v56  ;;  %5252 = vmatprep.subr.mxu1 %v6189_v0  ;;  %v2135_v56 = vsub.f32 %v362_v19, %v6303_v37  ;;  %v6413_v41 = vand.u32 4294901760, %v2655_v6 }
  0xf6   :  { %5263 = vmatprep.subr.mxu0 %v6227_v50  ;;  %5250 = vmatmul.mubr.f32.vlgmr.msra.gmra.mxu0 %v6205_v46  ;;  %v2078_v46 = vsub.f32 %v6290_v57, %v2077_v32 }
  0xf7   :  { %5253 = vmatpush3.msra.mxu1 %v6189_v0  ;;  %5264 = vmatpush3.msra.mxu0 %v6227_v50  ;;  %v6343_v50 = vand.u32 4294901760, %v2135_v56 }
  0xf8   :  { %5254 = vmatprep.subr.mxu1 %v6200_v43  ;;  %5265 = vmatprep.subr.mxu0 %v6242_v16  ;;  %v2079_v52 = vand.u32 4294901760, %v2078_v46 }
  0xf9   :  { %5255 = vmatpush3.msra.mxu1 %v6200_v43  ;;  %5266 = vmatpush3.msra.mxu0 %v6242_v16 }
  0xfa   :  { %5256 = vmatprep.subr.mxu1 %v6210_v33  ;;  %5267 = vmatprep.subr.mxu0 %v6250_v27 }
  0xfb   :  { %5257 = vmatpush3.msra.mxu1 %v6210_v33  ;;  %5268 = vmatpush3.msra.mxu0 %v6250_v27  ;;  %v390_v27 = vld [vmem:[#allocation2 + $0x48] sm:$0xff] }
  0xfc   :  { %5258 = vmatprep.subr.mxu1 %v6218_v20  ;;  %5269 = vmatprep.subr.mxu0 %v6257_v28  ;;  %v2538_v25 = vsel %vm397_vm0, %v390_v27, 0 }
  0xfd   :  { %5259 = vmatpush3.msra.mxu1 %v6218_v20  ;;  %5260 = vmatprep.mubr.f32.mxu1 %v1543_v31  ;;  %v2088_v31 = vsub.f32 %v6298_v22, %v2087_v26  ;;  %v6372_v9 = vand.u32 4294901760, %v2538_v25 }
  0xfe   :  { %5270 = vmatpush3.msra.mxu0 %v6257_v28  ;;  %5261 = vmatmul.mubr.f32.vlgmr.msra.gmra.mxu1 %v1553_v34  ;;  %v6335_v34 = vand.u32 4294901760, %v2128_v45  ;;  %v334_v28 = vadd.f32 %v5984_v61, %v5994_v2 }
  0xff   :  { %5271 = vmatprep.mubr.f32.mxu0 %v6180_v36  ;;  %5274 = vmatprep.subr.mxu1 %v6189_v0  ;;  %v6391_v53 = vsub.f32 %v2538_v25, %v6372_v9 }
 0x100   :  { %5285 = vmatprep.subr.mxu0 %v6281_v59  ;;  %5272 = vmatmul.mubr.f32.vlgmr.msra.gmra.mxu0 %v6187_v38  ;;  %v2130_v49 = vsub.f32 %v2128_v45, %v6335_v34  ;;  %v366_v2 = vmax.f32 %v334_v28, 0.0 }
 0x101   :  { %5275 = vmatpush3.msra.mxu1 %v6189_v0  ;;  %5286 = vmatpush3.msra.mxu0 %v6281_v59  ;;  %v2123_v0 = vsub.f32 %v2121_v17, %v6320_v23  ;;  %v2621_v63 = vand.u32 4294901760, %v6391_v53 }
 0x102   :  { %5276 = vmatprep.subr.mxu1 %v6200_v43  ;;  %5287 = vmatprep.subr.mxu0 %v6292_v29  ;;  %v2131_v54 = vand.u32 4294901760, %v2130_v49  ;;  %v6396_v40 = vand.u32 4294901760, %v366_v2 }
 0x103   :  { %5277 = vmatpush3.msra.mxu1 %v6200_v43  ;;  %5288 = vmatpush3.msra.mxu0 %v6292_v29  ;;  %v2089_v43 = vand.u32 4294901760, %v2088_v31  ;;  %v2124_v16 = vand.u32 4294901760, %v2123_v0  ;;  %v392_v31 = vld [vmem:[#allocation2 + $0x58] sm:$0xff] }
 0x104   :  { %5278 = vmatprep.subr.mxu1 %v6210_v33  ;;  %5289 = vmatprep.subr.mxu0 %v6303_v37  ;;  %v2669_v1 = vsub.f32 %v366_v2, %v6396_v40  ;;  %v3072_v0 = vsel %vm397_vm0, %v392_v31, 0 }
 0x105   :  { %5279 = vmatpush3.msra.mxu1 %v6210_v33  ;;  %5290 = vmatpush3.msra.mxu0 %v6303_v37  ;;  %v2137_v33 = vsub.f32 %v2135_v56, %v6343_v50 }
 0x106   :  { %5280 = vmatprep.subr.mxu1 %v6218_v20  ;;  %5291 = vmatprep.subr.mxu0 %v6311_v7 }
 0x107   :  { %5281 = vmatpush3.msra.mxu1 %v6218_v20  ;;  %5282 = vmatprep.mubr.f32.mxu1 %v6180_v36  ;;  %v2138_v20 = vand.u32 4294901760, %v2137_v33  ;;  %v389_v36 = vld [vmem:[#allocation2 + $0x40] sm:$0xff] }
 0x108   :  { %5292 = vmatpush3.msra.mxu0 %v6311_v7  ;;  %5283 = vmatmul.mubr.f32.vlgmr.msra.gmra.mxu1 %v6187_v38  ;;  %v2145_v38 = vand.u32 4294901760, %v2144_v30  ;;  %v2535_v48 = vsel %vm397_vm0, %v389_v36, 0 }
 0x109   :  { %5293 = vmatprep.mubr.f32.mxu0 %v2079_v52  ;;  %5296 = vmatprep.subr.mxu1 %v2124_v16  ;;  %v6367_v55 = vand.u32 4294901760, %v2535_v48 }
 0x10a   :  { %5307 = vmatprep.subr.mxu0 %v2121_v17  ;;  %5294 = vmatmul.mubr.f32.vlgmr.msra.gmra.mxu0 %v2089_v43  ;;  %v371_v43 = vmax.f32 %v5959_v60, 0.0 }
 0x10b   :  { %5297 = vmatpush3.msra.mxu1 %v2124_v16  ;;  %5308 = vmatpush3.msra.mxu0 %v2121_v17  ;;  %v6383_v58 = vsub.f32 %v2535_v48, %v6367_v55  ;;  %v6436_v17 = vand.u32 4294901760, %v2669_v1  ;;  %v369_v16 = vmax.f32 %v6056_v35, 0.0 }
 0x10c   :  { %5298 = vmatprep.subr.mxu1 %v2131_v54  ;;  %5309 = vmatprep.subr.mxu0 %v2128_v45 }
 0x10d   :  { %5299 = vmatpush3.msra.mxu1 %v2131_v54  ;;  %5310 = vmatpush3.msra.mxu0 %v2128_v45  ;;  %v2611_v12 = vand.u32 4294901760, %v6383_v58 }
 0x10e   :  { %5300 = vmatprep.subr.mxu1 %v2138_v20  ;;  %5311 = vmatprep.subr.mxu0 %v2135_v56 }
 0x10f   :  { %5301 = vmatpush3.msra.mxu1 %v2138_v20  ;;  %5312 = vmatpush3.msra.mxu0 %v2135_v56  ;;  %v2612_v19 = vsub.f32 %v6383_v58, %v2611_v12  ;;  %v6497_v20 = vand.u32 4294901760, %v369_v16 }
 0x110   :  { %5302 = vmatprep.subr.mxu1 %v2145_v38  ;;  %5313 = vmatprep.subr.mxu0 %v2142_v24 }
 0x111   :  { %5303 = vmatpush3.msra.mxu1 %v2145_v38  ;;  %5304 = vmatprep.mubr.f32.mxu1 %v6274_v15  ;;  %v3210_v44 = vsub.f32 %v369_v16, %v6497_v20 }
 0x112   :  { %5314 = vmatpush3.msra.mxu0 %v2142_v24  ;;  %5305 = vmatmul.mubr.f32.vlgmr.msra.gmra.mxu1 %v6279_v8  ;;  %v372_v24 = vmax.f32 %v5895_v10, 0.0  ;;  %v6465_v10 = vand.u32 4294901760, %v3072_v0 }
 0x113   :  { %5315 = vmatprep.mubr.f32.mxu0 %v6290_v57  ;;  %5318 = vmatprep.subr.mxu1 %v6281_v59  ;;  %v2622_v57 = vsub.f32 %v6391_v53, %v2621_v63 }
 0x114   :  { %5329 = vmatprep.subr.mxu0 %v6320_v23  ;;  %5316 = vmatmul.mubr.f32.vlgmr.msra.gmra.mxu0 %v6298_v22  ;;  %v2676_v22 = vsub.f32 %v365_v47, %v6404_v14  ;;  %v6467_v49 = vand.u32 4294901760, %v372_v24  ;;  %v6484_v33 = vsub.f32 %v3072_v0, %v6465_v10 }
 0x115   :  { %5319 = vmatpush3.msra.mxu1 %v6281_v59  ;;  %5330 = vmatpush3.msra.mxu0 %v6320_v23 }
 0x116   :  { %5320 = vmatprep.subr.mxu1 %v6292_v29  ;;  %5331 = vmatprep.subr.mxu0 %v6335_v34  ;;  %v6443_v45 = vand.u32 4294901760, %v2676_v22  ;;  %v3189_v54 = vsub.f32 %v372_v24, %v6467_v49  ;;  %v3155_v36 = vand.u32 4294901760, %v6484_v33 }
 0x117   :  { %5321 = vmatpush3.msra.mxu1 %v6292_v29  ;;  %5332 = vmatpush3.msra.mxu0 %v6335_v34 }
 0x118   :  { %5322 = vmatprep.subr.mxu1 %v6303_v37  ;;  %5333 = vmatprep.subr.mxu0 %v6343_v50  ;;  %v2678_v46 = vsub.f32 %v2676_v22, %v6443_v45  ;;  %v6506_v27 = vand.u32 4294901760, %v3189_v54  ;;  %v3156_v25 = vsub.f32 %v6484_v33, %v3155_v36 }
 0x119   :  { %5323 = vmatpush3.msra.mxu1 %v6303_v37  ;;  %5334 = vmatpush3.msra.mxu0 %v6343_v50  ;;  %v338_v50 = vadd.f32 %v5984_v61, %v5996_v3 }
 0x11a   :  { %5324 = vmatprep.subr.mxu1 %v6311_v7  ;;  %5335 = vmatprep.subr.mxu0 %v6350_v62 }
 0x11b   :  { %5325 = vmatpush3.msra.mxu1 %v6311_v7  ;;  %5326 = vmatprep.mubr.f32.mxu1 %v2077_v32  ;;  %v2613_v32 = vand.u32 4294901760, %v2612_v19  ;;  %v370_v3 = vmax.f32 %v338_v50, 0.0 }
 0x11c   :  { %5336 = vmatpush3.msra.mxu0 %v6350_v62  ;;  %5327 = vmatmul.mubr.f32.vlgmr.msra.gmra.mxu1 %v2087_v26  ;;  %v2664_v26 = vsub.f32 %v2662_v18, %v6428_v4  ;;  %v6478_v62 = vand.u32 4294901760, %v371_v43 }
 0x11d   :  { %5337 = vmatprep.mubr.f32.mxu0 %v6274_v15  ;;  %5340 = vmatprep.subr.mxu1 %v6281_v59  ;;  %v6489_v30 = vand.u32 4294901760, %v370_v3 }
 0x11e   :  { %5351 = vmatprep.subr.mxu0 %v6374_v21  ;;  %5338 = vmatmul.mubr.f32.vlgmr.msra.gmra.mxu0 %v6279_v8  ;;  %v2665_v56 = vand.u32 4294901760, %v2664_v26  ;;  %v3196_v38 = vsub.f32 %v371_v43, %v6478_v62 }
 0x11f   :  { %5341 = vmatpush3.msra.mxu1 %v6281_v59  ;;  %5352 = vmatpush3.msra.mxu0 %v6374_v21  ;;  %v2657_v59 = vsub.f32 %v2655_v6, %v6413_v41  ;;  %v3203_v48 = vsub.f32 %v370_v3, %v6489_v30 }
 0x120   :  { %5342 = vmatprep.subr.mxu1 %v6292_v29  ;;  %5353 = vmatprep.subr.mxu0 %v6385_v39  ;;  %v6521_v28 = vand.u32 4294901760, %v3196_v38 }
 0x121   :  { %5343 = vmatpush3.msra.mxu1 %v6292_v29  ;;  %5354 = vmatpush3.msra.mxu0 %v6385_v39  ;;  %v2623_v29 = vand.u32 4294901760, %v2622_v57  ;;  %v2658_v23 = vand.u32 4294901760, %v2657_v59  ;;  %v6529_v2 = vand.u32 4294901760, %v3203_v48  ;;  %v342_v57 = vadd.f32 %v5984_v61, %v5998_v13 }
 0x122   :  { %5344 = vmatprep.subr.mxu1 %v6303_v37  ;;  %5355 = vmatprep.subr.mxu0 %v6396_v40  ;;  %v3198_v47 = vsub.f32 %v3196_v38, %v6521_v28 }
 0x123   :  { %5345 = vmatpush3.msra.mxu1 %v6303_v37  ;;  %5356 = vmatpush3.msra.mxu0 %v6396_v40  ;;  %v2671_v37 = vsub.f32 %v2669_v1, %v6436_v17  ;;  %v374_v13 = vmax.f32 %v342_v57, 0.0 }
 0x124   :  { %5346 = vmatprep.subr.mxu1 %v6311_v7  ;;  %5357 = vmatprep.subr.mxu0 %v6404_v14 }
 0x125   :  { %5347 = vmatpush3.msra.mxu1 %v6311_v7  ;;  %5348 = vmatprep.mubr.f32.mxu1 %v6274_v15  ;;  %v2672_v7 = vand.u32 4294901760, %v2671_v37  ;;  %v391_v15 = vld [vmem:[#allocation2 + $0x50] sm:$0xff] }
 0x126   :  { %5358 = vmatpush3.msra.mxu0 %v6404_v14  ;;  %5349 = vmatmul.mubr.f32.vlgmr.msra.gmra.mxu1 %v6279_v8  ;;  %v2679_v8 = vand.u32 4294901760, %v2678_v46  ;;  %v3069_v34 = vsel %vm397_vm0, %v391_v15, 0 }
 0x127   :  { %5359 = vmatprep.mubr.f32.mxu0 %v2613_v32  ;;  %5362 = vmatprep.subr.mxu1 %v2658_v23  ;;  %v6460_v52 = vand.u32 4294901760, %v3069_v34  ;;  %v373_v32 = vmax.f32 %v6059_v51, 0.0 }
 0x128   :  { %5373 = vmatprep.subr.mxu0 %v2655_v6  ;;  %5360 = vmatmul.mubr.f32.vlgmr.msra.gmra.mxu0 %v2623_v29 }
 0x129   :  { %5363 = vmatpush3.msra.mxu1 %v2658_v23  ;;  %5374 = vmatpush3.msra.mxu0 %v2655_v6  ;;  %v6476_v60 = vsub.f32 %v3069_v34, %v6460_v52  ;;  %v6590_v23 = vand.u32 4294901760, %v373_v32 }
 0x12a   :  { %5364 = vmatprep.subr.mxu1 %v2665_v56  ;;  %5375 = vmatprep.subr.mxu0 %v2662_v18 }
 0x12b   :  { %5365 = vmatpush3.msra.mxu1 %v2665_v56  ;;  %5376 = vmatpush3.msra.mxu0 %v2662_v18  ;;  %v3145_v35 = vand.u32 4294901760, %v6476_v60  ;;  %v394_v18 = vld [vmem:[#allocation2 + $0x68] sm:$0xff]  ;;  %v3744_v34 = vsub.f32 %v373_v32, %v6590_v23 }
 0x12c   :  { %5366 = vmatprep.subr.mxu1 %v2672_v7  ;;  %5377 = vmatprep.subr.mxu0 %v2669_v1  ;;  %v3606_v19 = vsel %vm397_vm0, %v394_v18, 0 }
 0x12d   :  { %5367 = vmatpush3.msra.mxu1 %v2672_v7  ;;  %5378 = vmatpush3.msra.mxu0 %v2669_v1  ;;  %v3146_v42 = vsub.f32 %v6476_v60, %v3145_v35  ;;  %v376_v1 = vmax.f32 %v5898_v11, 0.0  ;;  %v6558_v11 = vand.u32 4294901760, %v3606_v19  ;;  %v6629_v3 = vand.u32 4294901760, %v3744_v34 }
 0x12e   :  { %5368 = vmatprep.subr.mxu1 %v2679_v8  ;;  %5379 = vmatprep.subr.mxu0 %v2676_v22 }
 0x12f   :  { %5369 = vmatpush3.msra.mxu1 %v2679_v8  ;;  %5370 = vmatprep.mubr.f32.mxu1 %v6367_v55  ;;  %v6560_v59 = vand.u32 4294901760, %v376_v1  ;;  %v6577_v29 = vsub.f32 %v3606_v19, %v6558_v11 }
 0x130   :  { %5380 = vmatpush3.msra.mxu0 %v2676_v22  ;;  %5371 = vmatmul.mubr.f32.vlgmr.msra.gmra.mxu1 %v6372_v9  ;;  %v375_v22 = vmax.f32 %v5962_v5, 0.0 }
 0x131   :  { %5381 = vmatprep.mubr.f32.mxu0 %v6383_v58  ;;  %5384 = vmatprep.subr.mxu1 %v6374_v21  ;;  %v3147_v58 = vand.u32 4294901760, %v3146_v42  ;;  %v3723_v26 = vsub.f32 %v376_v1, %v6560_v59  ;;  %v3689_v37 = vand.u32 4294901760, %v6577_v29 }
 0x132   :  { %5395 = vmatprep.subr.mxu0 %v6413_v41  ;;  %5382 = vmatmul.mubr.f32.vlgmr.msra.gmra.mxu0 %v6391_v53  ;;  %v6536_v53 = vand.u32 4294901760, %v3210_v44 }
 0x133   :  { %5385 = vmatpush3.msra.mxu1 %v6374_v21  ;;  %5396 = vmatpush3.msra.mxu0 %v6413_v41  ;;  %v6599_v46 = vand.u32 4294901760, %v3723_v26  ;;  %v3690_v8 = vsub.f32 %v6577_v29, %v3689_v37 }
 0x134   :  { %5386 = vmatprep.subr.mxu1 %v6385_v39  ;;  %5397 = vmatprep.subr.mxu0 %v6428_v4 }
 0x135   :  { %5387 = vmatpush3.msra.mxu1 %v6385_v39  ;;  %5398 = vmatpush3.msra.mxu0 %v6428_v4  ;;  %v3725_v24 = vsub.f32 %v3723_v26, %v6599_v46  ;;  %v3691_v43 = vand.u32 4294901760, %v3690_v8 }
 0x136   :  { %5388 = vmatprep.subr.mxu1 %v6396_v40  ;;  %5399 = vmatprep.subr.mxu0 %v6436_v17 }
 0x137   :  { %5389 = vmatpush3.msra.mxu1 %v6396_v40  ;;  %5400 = vmatpush3.msra.mxu0 %v6436_v17  ;;  %v6571_v17 = vand.u32 4294901760, %v375_v22 }
 0x138   :  { %5390 = vmatprep.subr.mxu1 %v6404_v14  ;;  %5401 = vmatprep.subr.mxu0 %v6443_v45 }
 0x139   :  { %5391 = vmatpush3.msra.mxu1 %v6404_v14  ;;  %5392 = vmatprep.mubr.f32.mxu1 %v2611_v12  ;;  %v3199_v12 = vand.u32 4294901760, %v3198_v47  ;;  %v3730_v56 = vsub.f32 %v375_v22, %v6571_v17 }
 0x13a   :  { %5402 = vmatpush3.msra.mxu0 %v6443_v45  ;;  %5393 = vmatmul.mubr.f32.vlgmr.msra.gmra.mxu1 %v2621_v63  ;;  %v3212_v63 = vsub.f32 %v3210_v44, %v6536_v53  ;;  %v6582_v45 = vand.u32 4294901760, %v374_v13 }
 0x13b   :  { %5403 = vmatprep.mubr.f32.mxu0 %v6367_v55  ;;  %5406 = vmatprep.subr.mxu1 %v6374_v21  ;;  %v6614_v31 = vand.u32 4294901760, %v3730_v56 }
 0x13c   :  { %5417 = vmatprep.subr.mxu0 %v6467_v49  ;;  %5404 = vmatmul.mubr.f32.vlgmr.msra.gmra.mxu0 %v6372_v9  ;;  %v3737_v7 = vsub.f32 %v374_v13, %v6582_v45 }
 0x13d   :  { %5407 = vmatpush3.msra.mxu1 %v6374_v21  ;;  %5418 = vmatpush3.msra.mxu0 %v6467_v49  ;;  %v3191_v21 = vsub.f32 %v3189_v54, %v6506_v27 }
 0x13e   :  { %5408 = vmatprep.subr.mxu1 %v6385_v39  ;;  %5419 = vmatprep.subr.mxu0 %v6478_v62  ;;  %v6622_v0 = vand.u32 4294901760, %v3737_v7 }
 0x13f   :  { %5409 = vmatpush3.msra.mxu1 %v6385_v39  ;;  %5420 = vmatpush3.msra.mxu0 %v6478_v62  ;;  %v3157_v39 = vand.u32 4294901760, %v3156_v25  ;;  %v3192_v6 = vand.u32 4294901760, %v3191_v21  ;;  %v6790_v25 = vld [vmem:[#allocation9_spill] sm:$0xff] }
 0x140   :  { %5410 = vmatprep.subr.mxu1 %v6396_v40  ;;  %5421 = vmatprep.subr.mxu0 %v6489_v30 }
 0x141   :  { %5411 = vmatpush3.msra.mxu1 %v6396_v40  ;;  %5422 = vmatpush3.msra.mxu0 %v6489_v30  ;;  %v3205_v40 = vsub.f32 %v3203_v48, %v6529_v2 }
 0x142   :  { %5412 = vmatprep.subr.mxu1 %v6404_v14  ;;  %5423 = vmatprep.subr.mxu0 %v6497_v20 }
 0x143   :  { %5413 = vmatpush3.msra.mxu1 %v6404_v14  ;;  %5414 = vmatprep.mubr.f32.mxu1 %v6367_v55  ;;  %v3206_v14 = vand.u32 4294901760, %v3205_v40  ;;  %v393_v55 = vld [vmem:[#allocation2 + $0x60] sm:$0xff] }
 0x144   :  { %5424 = vmatpush3.msra.mxu0 %v6497_v20  ;;  %5415 = vmatmul.mubr.f32.vlgmr.msra.gmra.mxu1 %v6372_v9  ;;  %v3213_v9 = vand.u32 4294901760, %v3212_v63  ;;  %v3603_v41 = vsel %vm397_vm0, %v393_v55, 0 }
 0x145   :  { %5425 = vmatprep.mubr.f32.mxu0 %v3147_v58  ;;  %5428 = vmatprep.subr.mxu1 %v3192_v6  ;;  %v6553_v4 = vand.u32 4294901760, %v3603_v41 }
 0x146   :  { %5439 = vmatprep.subr.mxu0 %v3189_v54  ;;  %5426 = vmatmul.mubr.f32.vlgmr.msra.gmra.mxu0 %v3157_v39  ;;  %v6791_v39 = vld [vmem:[#allocation11_spill] sm:$0xff] }
 0x147   :  { %5429 = vmatpush3.msra.mxu1 %v3192_v6  ;;  %5440 = vmatpush3.msra.mxu0 %v3189_v54  ;;  %v6569_v5 = vsub.f32 %v3603_v41, %v6553_v4  ;;  %v377_v47 = vmax.f32 %v6791_v39, 0.0 }
 0x148   :  { %5430 = vmatprep.subr.mxu1 %v3199_v12  ;;  %5441 = vmatprep.subr.mxu0 %v3196_v38 }
 0x149   :  { %5431 = vmatpush3.msra.mxu1 %v3199_v12  ;;  %5442 = vmatpush3.msra.mxu0 %v3196_v38  ;;  %v3679_v51 = vand.u32 4294901760, %v6569_v5  ;;  %v6683_v63 = vand.u32 4294901760, %v377_v47 }
 0x14a   :  { %5432 = vmatprep.subr.mxu1 %v3206_v14  ;;  %5443 = vmatprep.subr.mxu0 %v3203_v48 }
 0x14b   :  { %5433 = vmatpush3.msra.mxu1 %v3206_v14  ;;  %5444 = vmatpush3.msra.mxu0 %v3203_v48  ;;  %v3680_v15 = vsub.f32 %v6569_v5, %v3679_v51  ;;  %v4278_v57 = vsub.f32 %v377_v47, %v6683_v63 }
 0x14c   :  { %5434 = vmatprep.subr.mxu1 %v3213_v9  ;;  %5445 = vmatprep.subr.mxu0 %v3210_v44 }
 0x14d   :  { %5435 = vmatpush3.msra.mxu1 %v3213_v9  ;;  %5436 = vmatprep.mubr.f32.mxu1 %v6460_v52  ;;  %v3681_v50 = vand.u32 4294901760, %v3680_v15 }
 0x14e   :  { %5446 = vmatpush3.msra.mxu0 %v3210_v44  ;;  %5437 = vmatmul.mubr.f32.vlgmr.msra.gmra.mxu1 %v6465_v10 }
 0x14f   :  { %5447 = vmatprep.mubr.f32.mxu0 %v6476_v60  ;;  %5450 = vmatprep.subr.mxu1 %v6467_v49  ;;  %v3726_v60 = vand.u32 4294901760, %v3725_v24 }
 0x150   :  { %5461 = vmatprep.subr.mxu0 %v6506_v27  ;;  %5448 = vmatmul.mubr.f32.vlgmr.msra.gmra.mxu0 %v6484_v33  ;;  %v3746_v33 = vsub.f32 %v3744_v34, %v6629_v3 }
 0x151   :  { %5451 = vmatpush3.msra.mxu1 %v6467_v49  ;;  %5462 = vmatpush3.msra.mxu0 %v6506_v27  ;;  %v6789_v27 = vld [vmem:[#allocation10_spill] sm:$0xff] }
 0x152   :  { %5452 = vmatprep.subr.mxu1 %v6478_v62  ;;  %5463 = vmatprep.subr.mxu0 %v6521_v28  ;;  %v346_v48 = vadd.f32 %v5984_v61, %v6789_v27 }
 0x153   :  { %5453 = vmatpush3.msra.mxu1 %v6478_v62  ;;  %5464 = vmatpush3.msra.mxu0 %v6521_v28  ;;  %v379_v28 = vmax.f32 %v6790_v25, 0.0 }
 0x154   :  { %5454 = vmatprep.subr.mxu1 %v6489_v30  ;;  %5465 = vmatprep.subr.mxu0 %v6529_v2  ;;  %v378_v61 = vmax.f32 %v346_v48, 0.0 }
 0x155   :  { %5455 = vmatpush3.msra.mxu1 %v6489_v30  ;;  %5466 = vmatpush3.msra.mxu0 %v6529_v2  ;;  %v6664_v58 = vand.u32 4294901760, %v379_v28 }
 0x156   :  { %5456 = vmatprep.subr.mxu1 %v6497_v20  ;;  %5467 = vmatprep.subr.mxu0 %v6536_v53  ;;  %v6675_v40 = vand.u32 4294901760, %v378_v61 }
 0x157   :  { %5457 = vmatpush3.msra.mxu1 %v6497_v20  ;;  %5458 = vmatprep.mubr.f32.mxu1 %v3145_v35  ;;  %v4264_v55 = vsub.f32 %v379_v28, %v6664_v58 }
 0x158   :  { %5468 = vmatpush3.msra.mxu0 %v6536_v53  ;;  %5459 = vmatmul.mubr.f32.vlgmr.msra.gmra.mxu1 %v3155_v36  ;;  %v4271_v18 = vsub.f32 %v378_v61, %v6675_v40 }
 0x159   :  { %5469 = vmatprep.mubr.f32.mxu0 %v6460_v52  ;;  %5472 = vmatprep.subr.mxu1 %v6467_v49  ;;  %v6707_v19 = vand.u32 4294901760, %v4264_v55 }
 0x15a   :  { %5483 = vmatprep.subr.mxu0 %v6560_v59  ;;  %5470 = vmatmul.mubr.f32.vlgmr.msra.gmra.mxu0 %v6465_v10 }
 0x15b   :  { %5473 = vmatpush3.msra.mxu1 %v6467_v49  ;;  %5484 = vmatpush3.msra.mxu0 %v6560_v59  ;;  %v3732_v49 = vsub.f32 %v3730_v56, %v6614_v31  ;;  %v4266_v32 = vsub.f32 %v4264_v55, %v6707_v19 }
 0x15c   :  { %5474 = vmatprep.subr.mxu1 %v6478_v62  ;;  %5485 = vmatprep.subr.mxu0 %v6571_v17 }
 0x15d   :  { %5475 = vmatpush3.msra.mxu1 %v6478_v62  ;;  %5486 = vmatpush3.msra.mxu0 %v6571_v17  ;;  %v3739_v62 = vsub.f32 %v3737_v7, %v6622_v0  ;;  %v3733_v16 = vand.u32 4294901760, %v3732_v49 }
 0x15e   :  { %5476 = vmatprep.subr.mxu1 %v6489_v30  ;;  %5487 = vmatprep.subr.mxu0 %v6582_v45 }
 0x15f   :  { %5477 = vmatpush3.msra.mxu1 %v6489_v30  ;;  %5488 = vmatpush3.msra.mxu0 %v6582_v45  ;;  %v3740_v54 = vand.u32 4294901760, %v3739_v62  ;;  %v396_v30 = vld [vmem:[#allocation2 + $0x78] sm:$0xff] }
 0x160   :  { %5478 = vmatprep.subr.mxu1 %v6497_v20  ;;  %5489 = vmatprep.subr.mxu0 %v6590_v23  ;;  %v4140_v38 = vsel %vm397_vm0, %v396_v30, 0 }
 0x161   :  { %5479 = vmatpush3.msra.mxu1 %v6497_v20  ;;  %5480 = vmatprep.mubr.f32.mxu1 %v6460_v52  ;;  %v395_v52 = vld [vmem:[#allocation2 + $0x70] sm:$0xff]  ;;  %v6788_v20 = vld [vmem:[#allocation8_spill] sm:$0xff]  ;;  %v6651_v44 = vand.u32 4294901760, %v4140_v38 }
 0x162   :  { %5490 = vmatpush3.msra.mxu0 %v6590_v23  ;;  %5481 = vmatmul.mubr.f32.vlgmr.msra.gmra.mxu1 %v6465_v10  ;;  %v3747_v10 = vand.u32 4294901760, %v3746_v33  ;;  %v4137_v35 = vsel %vm397_vm0, %v395_v52, 0  ;;  %v380_v36 = vmax.f32 %v6788_v20, 0.0 }
 0x163   :  { %5491 = vmatprep.mubr.f32.mxu0 %v3681_v50  ;;  %5494 = vmatprep.subr.mxu1 %v3726_v60  ;;  %v6646_v42 = vand.u32 4294901760, %v4137_v35  ;;  %v6670_v53 = vsub.f32 %v4140_v38, %v6651_v44 }
 0x164   :  { %5505 = vmatprep.subr.mxu0 %v3723_v26  ;;  %5492 = vmatmul.mubr.f32.vlgmr.msra.gmra.mxu0 %v3691_v43  ;;  %v6653_v21 = vand.u32 4294901760, %v380_v36 }
 0x165   :  { %5495 = vmatpush3.msra.mxu1 %v3726_v60  ;;  %5506 = vmatpush3.msra.mxu0 %v3723_v26  ;;  %v6662_v2 = vsub.f32 %v4137_v35, %v6646_v42  ;;  %v4223_v14 = vand.u32 4294901760, %v6670_v53 }
 0x166   :  { %5496 = vmatprep.subr.mxu1 %v3733_v16  ;;  %5507 = vmatprep.subr.mxu0 %v3730_v56  ;;  %v4257_v6 = vsub.f32 %v380_v36, %v6653_v21 }
 0x167   :  { %5497 = vmatpush3.msra.mxu1 %v3733_v16  ;;  %5508 = vmatpush3.msra.mxu0 %v3730_v56  ;;  %v4213_v12 = vand.u32 4294901760, %v6662_v2  ;;  %v4224_v1 = vsub.f32 %v6670_v53, %v4223_v14  ;;  %v4267_v56 = vand.u32 4294901760, %v4266_v32 }
 0x168   :  { %5498 = vmatprep.subr.mxu1 %v3740_v54  ;;  %5509 = vmatprep.subr.mxu0 %v3737_v7  ;;  %v6692_v9 = vand.u32 4294901760, %v4257_v6 }
 0x169   :  { %5499 = vmatpush3.msra.mxu1 %v3740_v54  ;;  %5510 = vmatpush3.msra.mxu0 %v3737_v7  ;;  %v4214_v41 = vsub.f32 %v6662_v2, %v4213_v12 }
 0x16a   :  { %5500 = vmatprep.subr.mxu1 %v3747_v10  ;;  %5511 = vmatprep.subr.mxu0 %v3744_v34  ;;  %v4259_v22 = vsub.f32 %v4257_v6, %v6692_v9 }
 0x16b   :  { %5501 = vmatpush3.msra.mxu1 %v3747_v10  ;;  %5502 = vmatprep.mubr.f32.mxu1 %v6553_v4  ;;  %v4215_v13 = vand.u32 4294901760, %v4214_v41 }
 0x16c   :  { %5512 = vmatpush3.msra.mxu0 %v3744_v34  ;;  %5503 = vmatmul.mubr.f32.vlgmr.msra.gmra.mxu1 %v6558_v11  ;;  %v4260_v26 = vand.u32 4294901760, %v4259_v22 }
 0x16d   :  { %5513 = vmatprep.mubr.f32.mxu0 %v6569_v5  ;;  %5516 = vmatprep.subr.mxu1 %v6560_v59 }
 0x16e   :  { %5527 = vmatprep.subr.mxu0 %v6599_v46  ;;  %5514 = vmatmul.mubr.f32.vlgmr.msra.gmra.mxu0 %v6577_v29  ;;  %v6722_v29 = vand.u32 4294901760, %v4278_v57 }
 0x16f   :  { %5517 = vmatpush3.msra.mxu1 %v6560_v59  ;;  %5528 = vmatpush3.msra.mxu0 %v6599_v46 }
 0x170   :  { %5518 = vmatprep.subr.mxu1 %v6571_v17  ;;  %5529 = vmatprep.subr.mxu0 %v6614_v31  ;;  %v5097_v5 = vpop.f32.mrf.mxu0  ;;  %v4280_v46 = vsub.f32 %v4278_v57, %v6722_v29 }
 0x171   :  { %5519 = vmatpush3.msra.mxu1 %v6571_v17  ;;  %5530 = vmatpush3.msra.mxu0 %v6614_v31 }
 0x172   :  { %5520 = vmatprep.subr.mxu1 %v6582_v45  ;;  %5531 = vmatprep.subr.mxu0 %v6622_v0  ;;  %v4281_v7 = vand.u32 4294901760, %v4280_v46 }
 0x173   :  { %5521 = vmatpush3.msra.mxu1 %v6582_v45  ;;  %5532 = vmatpush3.msra.mxu0 %v6622_v0 }
 0x174   :  { %5522 = vmatprep.subr.mxu1 %v6590_v23  ;;  %5533 = vmatprep.subr.mxu0 %v6629_v3 }
 0x175   :  { %5523 = vmatpush3.msra.mxu1 %v6590_v23  ;;  %5524 = vmatprep.mubr.f32.mxu1 %v3679_v51  ;;  %v479_v51 = vpop.f32.mrf.mxu0 }
 0x176   :  { %5534 = vmatpush3.msra.mxu0 %v6629_v3  ;;  %5525 = vmatmul.mubr.f32.vlgmr.msra.gmra.mxu1 %v3689_v37 }
 0x177   :  { %5535 = vmatprep.mubr.f32.mxu0 %v6553_v4  ;;  %5538 = vmatprep.subr.mxu1 %v6560_v59 }
 0x178   :  { %5549 = vmatprep.subr.mxu0 %v6653_v21  ;;  %5536 = vmatmul.mubr.f32.vlgmr.msra.gmra.mxu0 %v6558_v11 }
 0x179   :  { %5539 = vmatpush3.msra.mxu1 %v6560_v59  ;;  %5550 = vmatpush3.msra.mxu0 %v6653_v21  ;;  %v6715_v59 = vand.u32 4294901760, %v4271_v18 }
 0x17a   :  { %5540 = vmatprep.subr.mxu1 %v6571_v17  ;;  %5551 = vmatprep.subr.mxu0 %v6664_v58 }
 0x17b   :  { %5541 = vmatpush3.msra.mxu1 %v6571_v17  ;;  %5552 = vmatpush3.msra.mxu0 %v6664_v58  ;;  %v4225_v17 = vand.u32 4294901760, %v4224_v1  ;;  %v5108_v37 = vpop.f32.mrf.mxu1 }
 0x17c   :  { %5542 = vmatprep.subr.mxu1 %v6582_v45  ;;  %5553 = vmatprep.subr.mxu0 %v6675_v40  ;;  %v587_v43 = vadd.f32 %v5108_v37, %v5097_v5 }
 0x17d   :  { %5543 = vmatpush3.msra.mxu1 %v6582_v45  ;;  %5554 = vmatpush3.msra.mxu0 %v6675_v40  ;;  %v4273_v45 = vsub.f32 %v4271_v18, %v6715_v59 }
 0x17e   :  { %5544 = vmatprep.subr.mxu1 %v6590_v23  ;;  %5555 = vmatprep.subr.mxu0 %v6683_v63 }
 0x17f   :  { %5545 = vmatpush3.msra.mxu1 %v6590_v23  ;;  %5546 = vmatprep.mubr.f32.mxu1 %v6553_v4  ;;  %v4274_v4 = vand.u32 4294901760, %v4273_v45  ;;  %v580_v23 = vpop.f32.mrf.mxu1 }
 0x180   :  { %5556 = vmatpush3.msra.mxu0 %v6683_v63  ;;  %5547 = vmatmul.mubr.f32.vlgmr.msra.gmra.mxu1 %v6558_v11  ;;  %v5119_v11 = vpop.f32.mrf.mxu0  ;;  %v581_v8 = vadd.f32 %v580_v23, %v479_v51 }
 0x181   :  { %5557 = vmatprep.mubr.f32.mxu0 %v4215_v13  ;;  %5560 = vmatprep.subr.mxu1 %v4260_v26  ;;  %v674_v62 = vadd.f32 %v5119_v11, %v587_v43 }
 0x182   :  { %5571 = vmatprep.subr.mxu0 %v4257_v6  ;;  %5558 = vmatmul.mubr.f32.vlgmr.msra.gmra.mxu0 %v4225_v17  ;;  %v666_v31 = vpop.f32.mrf.mxu0 }
 0x183   :  { %5561 = vmatpush3.msra.mxu1 %v4260_v26  ;;  %5572 = vmatpush3.msra.mxu0 %v4257_v6  ;;  %v667_v0 = vadd.f32 %v666_v31, %v581_v8 }
 0x184   :  { %5562 = vmatprep.subr.mxu1 %v4267_v56  ;;  %5573 = vmatprep.subr.mxu0 %v4264_v55  ;;  %v5130_v15 = vpop.f32.mrf.mxu1  ;;  %v5141_v24 = vpop.f32.mrf.mxu0 }
 0x185   :  { %5563 = vmatpush3.msra.mxu1 %v4267_v56  ;;  %5574 = vmatpush3.msra.mxu0 %v4264_v55  ;;  %v759_v33 = vadd.f32 %v5130_v15, %v674_v62 }
 0x186   :  { %5564 = vmatprep.subr.mxu1 %v4274_v4  ;;  %5575 = vmatprep.subr.mxu0 %v4271_v18  ;;  %v750_v34 = vpop.f32.mrf.mxu1  ;;  %v841_v3 = vpop.f32.mrf.mxu0 }
 0x187   :  { %5565 = vmatpush3.msra.mxu1 %v4274_v4  ;;  %5576 = vmatpush3.msra.mxu0 %v4271_v18  ;;  %v751_v49 = vadd.f32 %v750_v34, %v667_v0  ;;  %v848_v10 = vadd.f32 %v5141_v24, %v759_v33 }
 0x188   :  { %5566 = vmatprep.subr.mxu1 %v4281_v7  ;;  %5577 = vmatprep.subr.mxu0 %v4278_v57 }
 0x189   :  { %5567 = vmatpush3.msra.mxu1 %v4281_v7  ;;  %5568 = vmatprep.mubr.f32.mxu1 %v6646_v42  ;;  %v842_v16 = vadd.f32 %v841_v3, %v751_v49 }
 0x18a   :  { %5578 = vmatpush3.msra.mxu0 %v4278_v57  ;;  %5569 = vmatmul.mubr.f32.vlgmr.msra.gmra.mxu1 %v6651_v44 }
 0x18b   :  { %5579 = vmatprep.mubr.f32.mxu0 %v6662_v2  ;;  %5582 = vmatprep.subr.mxu1 %v6653_v21 }
 0x18c   :  { %5593 = vmatprep.subr.mxu0 %v6692_v9  ;;  %5580 = vmatmul.mubr.f32.vlgmr.msra.gmra.mxu0 %v6670_v53  ;;  %v5152_v50 = vpop.f32.mrf.mxu1 }
 0x18d   :  { %5583 = vmatpush3.msra.mxu1 %v6653_v21  ;;  %5594 = vmatpush3.msra.mxu0 %v6692_v9  ;;  %v929_v30 = vadd.f32 %v5152_v50, %v848_v10 }
 0x18e   :  { %5584 = vmatprep.subr.mxu1 %v6664_v58  ;;  %5595 = vmatprep.subr.mxu0 %v6707_v19  ;;  %v922_v60 = vpop.f32.mrf.mxu1  ;;  %v5163_v52 = vpop.f32.mrf.mxu0 }
 0x18f   :  { %5585 = vmatpush3.msra.mxu1 %v6664_v58  ;;  %5596 = vmatpush3.msra.mxu0 %v6707_v19  ;;  %v923_v54 = vadd.f32 %v922_v60, %v842_v16 }
 0x190   :  { %5586 = vmatprep.subr.mxu1 %v6675_v40  ;;  %5597 = vmatprep.subr.mxu0 %v6715_v59  ;;  %v1013_v35 = vpop.f32.mrf.mxu0 }
 0x191   :  { %5587 = vmatpush3.msra.mxu1 %v6675_v40  ;;  %5598 = vmatpush3.msra.mxu0 %v6715_v59 }
 0x192   :  { %5588 = vmatprep.subr.mxu1 %v6683_v63  ;;  %5599 = vmatprep.subr.mxu0 %v6722_v29 }
 0x193   :  { %5589 = vmatpush3.msra.mxu1 %v6683_v63  ;;  %5590 = vmatprep.mubr.f32.mxu1 %v4213_v12 }
 0x194   :  { %5600 = vmatpush3.msra.mxu0 %v6722_v29  ;;  %5591 = vmatmul.mubr.f32.vlgmr.msra.gmra.mxu1 %v4223_v14 }
 0x195   :  { %5604 = vmatprep.subr.mxu1 %v6653_v21  ;;  %5601 = vmatprep.mubr.f32.mxu0 %v6646_v42 }
 0x196   :  { %5605 = vmatpush3.msra.mxu1 %v6653_v21  ;;  %5602 = vmatmul.mubr.f32.vlgmr.msra.gmra.mxu0 %v6651_v44  ;;  %v5174_v20 = vpop.f32.mrf.mxu1 }
 0x197   :  { %5606 = vmatprep.subr.mxu1 %v6664_v58  ;;  %5612 = vmatprep.mubr.f32.mxu1 %v6646_v42  ;;  %v1121_v21 = vadd.f32 %v5174_v20, %v5163_v52 }
 0x198   :  { %5607 = vmatpush3.msra.mxu1 %v6664_v58  ;;  %4670 = vxpose.xlu0.b32.start [1/16] %v923_v54, 128  ;;  %v1114_v36 = vpop.f32.mrf.mxu1  ;;  %v5185_v38 = vpop.f32.mrf.mxu0 }
 0x199   :  { %5608 = vmatprep.subr.mxu1 %v6675_v40  ;;  %v1115_v48 = vadd.f32 %v1114_v36, %v1013_v35  ;;  %v1208_v39 = vadd.f32 %v5185_v38, %v1121_v21 }
 0x19a   :  { %5609 = vmatpush3.msra.mxu1 %v6675_v40  ;;  %v1200_v42 = vpop.f32.mrf.mxu0 }
 0x19b   :  { %5610 = vmatprep.subr.mxu1 %v6683_v63  ;;  %v1201_v61 = vadd.f32 %v1200_v42, %v1115_v48 }
 0x19c   :  { %5611 = vmatpush3.msra.mxu1 %v6683_v63  ;;  %4671 = vxpose.xlu0.b32.cont [2/16] %v929_v30, 128 }
 0x19d   :  { %5613 = vmatmul.mubr.f32.vlgmr.msra.gmra.mxu1 %v6651_v44 }
 0x1a0   :  { %v5196_v27 = vpop.f32.mrf.mxu1 }
 0x1a1   :  { %v1293_v53 = vadd.f32 %v5196_v27, %v1208_v39 }
 0x1a2   :  { %v1284_v25 = vpop.f32.mrf.mxu1  ;;  %v5207_v28 = vpop.f32.mrf.mxu0 }
 0x1a3   :  { %v1285_v2 = vadd.f32 %v1284_v25, %v1201_v61  ;;  %v1382_v63 = vadd.f32 %v5207_v28, %v1293_v53 }
 0x1a4   :  { %v1375_v58 = vpop.f32.mrf.mxu0 }
 0x1a5   :  { %v1376_v6 = vadd.f32 %v1375_v58, %v1285_v2 }
 0x1aa   :  { %v5218_v47 = vpop.f32.mrf.mxu1 }
 0x1ab   :  { %v1463_v44 = vadd.f32 %v5218_v47, %v1382_v63 }
 0x1ac   :  { %v1456_v40 = vpop.f32.mrf.mxu1  ;;  %v5229_v14 = vpop.f32.mrf.mxu0 }
 0x1ad   :  { %v1457_v12 = vadd.f32 %v1456_v40, %v1376_v6 }
 0x1ae   :  { %v1547_v55 = vpop.f32.mrf.mxu0 }
 0x1af   :  { %4672 = vxpose.xlu0.b32.cont [3/16] %v1457_v12, 128 }
 0x1b3   :  { %4673 = vxpose.xlu0.b32.cont [4/16] %v1463_v44, 128 }
 0x1b4   :  { %v5240_v9 = vpop.f32.mrf.mxu1 }
 0x1b5   :  { %v1655_v13 = vadd.f32 %v5240_v9, %v5229_v14 }
 0x1b6   :  { %v1648_v18 = vpop.f32.mrf.mxu1  ;;  %v5251_v41 = vpop.f32.mrf.mxu0 }
 0x1b7   :  { %v1649_v19 = vadd.f32 %v1648_v18, %v1547_v55  ;;  %v1742_v29 = vadd.f32 %v5251_v41, %v1655_v13 }
 0x1b8   :  { %v1734_v57 = vpop.f32.mrf.mxu0 }
 0x1b9   :  { %v1735_v5 = vadd.f32 %v1734_v57, %v1649_v19 }
 0x1be   :  { %v5262_v1 = vpop.f32.mrf.mxu1 }
 0x1bf   :  { %v1827_v45 = vadd.f32 %v5262_v1, %v1742_v29 }
 0x1c0   :  { %v1818_v22 = vpop.f32.mrf.mxu1  ;;  %v5273_v59 = vpop.f32.mrf.mxu0 }
 0x1c1   :  { %v1819_v17 = vadd.f32 %v1818_v22, %v1735_v5  ;;  %v1916_v46 = vadd.f32 %v5273_v59, %v1827_v45 }
 0x1c2   :  { %v1909_v32 = vpop.f32.mrf.mxu0 }
 0x1c3   :  { %v1910_v51 = vadd.f32 %v1909_v32, %v1819_v17 }
 0x1c8   :  { %v5284_v26 = vpop.f32.mrf.mxu1 }
 0x1c9   :  { %v1997_v4 = vadd.f32 %v5284_v26, %v1916_v46 }
 0x1ca   :  { %v1990_v37 = vpop.f32.mrf.mxu1  ;;  %v5295_v23 = vpop.f32.mrf.mxu0 }
 0x1cb   :  { %v1991_v56 = vadd.f32 %v1990_v37, %v1910_v51 }
 0x1cc   :  { %v2081_v11 = vpop.f32.mrf.mxu0 }
 0x1cd   :  { %4674 = vxpose.xlu0.b32.cont [5/16] %v1991_v56, 128 }
 0x1d1   :  { %4675 = vxpose.xlu0.b32.cont [6/16] %v1997_v4, 128 }
 0x1d2   :  { %v5306_v7 = vpop.f32.mrf.mxu1 }
 0x1d3   :  { %v2189_v43 = vadd.f32 %v5306_v7, %v5295_v23 }
 0x1d4   :  { %v2182_v15 = vpop.f32.mrf.mxu1  ;;  %v5317_v8 = vpop.f32.mrf.mxu0 }
 0x1d5   :  { %v2183_v34 = vadd.f32 %v2182_v15, %v2081_v11  ;;  %v2276_v62 = vadd.f32 %v5317_v8, %v2189_v43 }
 0x1d6   :  { %v2268_v24 = vpop.f32.mrf.mxu0 }
 0x1d7   :  { %v2269_v49 = vadd.f32 %v2268_v24, %v2183_v34 }
 0x1dc   :  { %v5328_v31 = vpop.f32.mrf.mxu1 }
 0x1dd   :  { %v2361_v33 = vadd.f32 %v5328_v31, %v2276_v62 }
 0x1de   :  { %v2352_v0 = vpop.f32.mrf.mxu1  ;;  %v5339_v50 = vpop.f32.mrf.mxu0 }
 0x1df   :  { %v2353_v3 = vadd.f32 %v2352_v0, %v2269_v49  ;;  %v2450_v30 = vadd.f32 %v5339_v50, %v2361_v33 }
 0x1e0   :  { %v2443_v60 = vpop.f32.mrf.mxu0 }
 0x1e1   :  { %v2444_v54 = vadd.f32 %v2443_v60, %v2353_v3 }
 0x1e6   :  { %v5350_v16 = vpop.f32.mrf.mxu1 }
 0x1e7   :  { %v2531_v35 = vadd.f32 %v5350_v16, %v2450_v30 }
 0x1e8   :  { %v2524_v52 = vpop.f32.mrf.mxu1  ;;  %v5361_v20 = vpop.f32.mrf.mxu0 }
 0x1e9   :  { %v2525_v10 = vadd.f32 %v2524_v52, %v2444_v54 }
 0x1ea   :  { %v2615_v36 = vpop.f32.mrf.mxu0 }
 0x1eb   :  { %4676 = vxpose.xlu0.b32.cont [7/16] %v2525_v10, 128 }
 0x1ef   :  { %4677 = vxpose.xlu0.b32.cont [8/16] %v2531_v35, 128 }
 0x1f0   :  { %v5372_v38 = vpop.f32.mrf.mxu1 }
 0x1f1   :  { %v2723_v2 = vadd.f32 %v5372_v38, %v5361_v20 }
 0x1f2   :  { %v2716_v27 = vpop.f32.mrf.mxu1  ;;  %v5383_v48 = vpop.f32.mrf.mxu0 }
 0x1f3   :  { %v2717_v25 = vadd.f32 %v2716_v27, %v2615_v36  ;;  %v2810_v53 = vadd.f32 %v5383_v48, %v2723_v2 }
 0x1f4   :  { %v2802_v28 = vpop.f32.mrf.mxu0 }
 0x1f5   :  { %v2803_v58 = vadd.f32 %v2802_v28, %v2717_v25 }
 0x1fa   :  { %v5394_v42 = vpop.f32.mrf.mxu1 }
 0x1fb   :  { %v2895_v40 = vadd.f32 %v5394_v42, %v2810_v53 }
 0x1fc   :  { %v2886_v21 = vpop.f32.mrf.mxu1  ;;  %v5405_v61 = vpop.f32.mrf.mxu0 }
 0x1fd   :  { %v2887_v39 = vadd.f32 %v2886_v21, %v2803_v58  ;;  %v2984_v14 = vadd.f32 %v5405_v61, %v2895_v40 }
 0x1fe   :  { %v2977_v47 = vpop.f32.mrf.mxu0 }
 0x1ff   :  { %v2978_v12 = vadd.f32 %v2977_v47, %v2887_v39 }
 0x204   :  { %v5416_v6 = vpop.f32.mrf.mxu1 }
 0x205   :  { %v3065_v55 = vadd.f32 %v5416_v6, %v2984_v14 }
 0x206   :  { %v3058_v63 = vpop.f32.mrf.mxu1  ;;  %v5427_v9 = vpop.f32.mrf.mxu0 }
 0x207   :  { %v3059_v44 = vadd.f32 %v3058_v63, %v2978_v12 }
 0x208   :  { %v3149_v18 = vpop.f32.mrf.mxu0 }
 0x209   :  { %4678 = vxpose.xlu0.b32.cont [9/16] %v3059_v44, 128 }
 0x20d   :  { %4679 = vxpose.xlu0.b32.cont [10/16] %v3065_v55, 128 }
 0x20e   :  { %v5438_v41 = vpop.f32.mrf.mxu1 }
 0x20f   :  { %v3257_v17 = vadd.f32 %v5438_v41, %v5427_v9  ;;  %v4798_v41 = vld [vmem:[%s6776_s4] ss:$0 sm:$0xff] }
 0x210   :  { %v3250_v1 = vpop.f32.mrf.mxu1  ;;  %v5449_v19 = vpop.f32.mrf.mxu0 }
 0x211   :  { %v3251_v22 = vadd.f32 %v3250_v1, %v3149_v18  ;;  %v3344_v45 = vadd.f32 %v5449_v19, %v3257_v17 }
 0x212   :  { %v3336_v59 = vpop.f32.mrf.mxu0 }
 0x213   :  { %v3337_v32 = vadd.f32 %v3336_v59, %v3251_v22 }
 0x218   :  { %v5460_v57 = vpop.f32.mrf.mxu1 }
 0x219   :  { %v3429_v37 = vadd.f32 %v5460_v57, %v3344_v45 }
 0x21a   :  { %v3420_v13 = vpop.f32.mrf.mxu1  ;;  %v5471_v5 = vpop.f32.mrf.mxu0 }
 0x21b   :  { %v3421_v29 = vadd.f32 %v3420_v13, %v3337_v32  ;;  %v3518_v23 = vadd.f32 %v5471_v5, %v3429_v37 }
 0x21c   :  { %v3511_v26 = vpop.f32.mrf.mxu0 }
 0x21d   :  { %v3512_v56 = vadd.f32 %v3511_v26, %v3421_v29 }
 0x222   :  { %v5482_v51 = vpop.f32.mrf.mxu1 }
 0x223   :  { %v3599_v11 = vadd.f32 %v5482_v51, %v3518_v23 }
 0x224   :  { %v3592_v46 = vpop.f32.mrf.mxu1  ;;  %v5493_v7 = vpop.f32.mrf.mxu0 }
 0x225   :  { %v3593_v4 = vadd.f32 %v3592_v46, %v3512_v56 }
 0x226   :  { %v3683_v15 = vpop.f32.mrf.mxu0 }
 0x227   :  { %4680 = vxpose.xlu0.b32.cont [11/16] %v3593_v4, 128 }
 0x22b   :  { %4681 = vxpose.xlu0.b32.cont [12/16] %v3599_v11, 128 }
 0x22c   :  { %v5504_v8 = vpop.f32.mrf.mxu1 }
 0x22d   :  { %v3791_v3 = vadd.f32 %v5504_v8, %v5493_v7 }
 0x22e   :  { %v3784_v31 = vpop.f32.mrf.mxu1  ;;  %v5515_v34 = vpop.f32.mrf.mxu0 }
 0x22f   :  { %v3785_v0 = vadd.f32 %v3784_v31, %v3683_v15  ;;  %v3878_v33 = vadd.f32 %v5515_v34, %v3791_v3 }
 0x230   :  { %v3870_v50 = vpop.f32.mrf.mxu0 }
 0x231   :  { %v3871_v60 = vadd.f32 %v3870_v50, %v3785_v0 }
 0x236   :  { %v5526_v24 = vpop.f32.mrf.mxu1 }
 0x237   :  { %v3963_v52 = vadd.f32 %v5526_v24, %v3878_v33 }
 0x238   :  { %v3954_v43 = vpop.f32.mrf.mxu1  ;;  %v5537_v49 = vpop.f32.mrf.mxu0 }
 0x239   :  { %v3955_v62 = vadd.f32 %v3954_v43, %v3871_v60  ;;  %v4052_v20 = vadd.f32 %v5537_v49, %v3963_v52 }
 0x23a   :  { %v4045_v16 = vpop.f32.mrf.mxu0 }
 0x23b   :  { %v4046_v10 = vadd.f32 %v4045_v16, %v3955_v62 }
 0x240   :  { %v5548_v54 = vpop.f32.mrf.mxu1 }
 0x241   :  { %v4133_v36 = vadd.f32 %v5548_v54, %v4052_v20 }
 0x242   :  { %v4126_v30 = vpop.f32.mrf.mxu1  ;;  %v5559_v38 = vpop.f32.mrf.mxu0 }
 0x243   :  { %v4127_v35 = vadd.f32 %v4126_v30, %v4046_v10 }
 0x244   :  { %v4217_v27 = vpop.f32.mrf.mxu0 }
 0x245   :  { %4682 = vxpose.xlu0.b32.cont [13/16] %v4127_v35, 128 }
 0x249   :  { %4683 = vxpose.xlu0.b32.cont [14/16] %v4133_v36, 128 }
 0x24a   :  { %v5570_v48 = vpop.f32.mrf.mxu1 }
 0x24b   :  { %v4325_v39 = vadd.f32 %v5570_v48, %v5559_v38 }
 0x24c   :  { %v4318_v42 = vpop.f32.mrf.mxu1  ;;  %v5581_v25 = vpop.f32.mrf.mxu0 }
 0x24d   :  { %v4319_v28 = vadd.f32 %v4318_v42, %v4217_v27  ;;  %v4412_v40 = vadd.f32 %v5581_v25, %v4325_v39 }
 0x24e   :  { %v4404_v61 = vpop.f32.mrf.mxu0 }
 0x24f   :  { %v4405_v47 = vadd.f32 %v4404_v61, %v4319_v28 }
 0x254   :  { %v5592_v21 = vpop.f32.mrf.mxu1 }
 0x255   :  { %v4497_v63 = vadd.f32 %v5592_v21, %v4412_v40 }
 0x256   :  { %v4488_v2 = vpop.f32.mrf.mxu1  ;;  %v5603_v58 = vpop.f32.mrf.mxu0 }
 0x257   :  { %v4489_v53 = vadd.f32 %v4488_v2, %v4405_v47  ;;  %v4586_v9 = vadd.f32 %v5603_v58, %v4497_v63 }
 0x258   :  { %v4579_v6 = vpop.f32.mrf.mxu0 }
 0x259   :  { %v4580_v44 = vadd.f32 %v4579_v6, %v4489_v53 }
 0x25d   :  { %v5614_v12 = vpop.f32.mrf.mxu1 }
 0x25e   :  { %v4667_v18 = vadd.f32 %v5614_v12, %v4586_v9 }
 0x25f   :  { %v4660_v14 = vpop.f32.mrf.mxu1 }
 0x260   :  { %v4661_v55 = vadd.f32 %v4660_v14, %v4580_v44 }
 0x262   :  { %4684 = vxpose.xlu0.b32.cont [15/16] %v4661_v55, 128 }
 0x266   :  { %4685 = vxpose.xlu0.b32.end [16/16] %v4667_v18, 128 }
 0x2a6   :  { %v4686_v1 = vpop.trf.xlu0 }
 0x2a7   :  { %v4709_v19 = vadd.f32 %v4798_v41, %v4686_v1 }
 0x2a9   :  { %v4725_v57 = vmax.f32 %v4709_v19, 0.0 }
 0x2aa   :  { %v4687_v22 = vpop.trf.xlu0 }
 0x2ab   :  { %4741 = vst [vmem:[#allocation5] sm:$0xff] %v4725_v57  ;;  %v4710_v59 = vadd.f32 %v4798_v41, %v4687_v22 }
 0x2ad   :  { %v4726_v13 = vmax.f32 %v4710_v59, 0.0 }
 0x2ae   :  { %v4688_v5 = vpop.trf.xlu0 }
 0x2af   :  { %4742 = vst [vmem:[#allocation5 + $0x8] sm:$0xff] %v4726_v13  ;;  %v4711_v17 = vadd.f32 %v4798_v41, %v4688_v5 }
 0x2b1   :  { %v4727_v32 = vmax.f32 %v4711_v17, 0.0 }
 0x2b2   :  { %v4689_v29 = vpop.trf.xlu0 }
 0x2b3   :  { %4743 = vst [vmem:[#allocation5 + $0x10] sm:$0xff] %v4727_v32  ;;  %v4712_v26 = vadd.f32 %v4798_v41, %v4689_v29 }
 0x2b5   :  { %v4728_v45 = vmax.f32 %v4712_v26, 0.0 }
 0x2b6   :  { %v4690_v51 = vpop.trf.xlu0 }
 0x2b7   :  { %4744 = vst [vmem:[#allocation5 + $0x18] sm:$0xff] %v4728_v45  ;;  %v4713_v37 = vadd.f32 %v4798_v41, %v4690_v51 }
 0x2b9   :  { %v4729_v56 = vmax.f32 %v4713_v37, 0.0 }
 0x2ba   :  { %v4691_v46 = vpop.trf.xlu0 }
 0x2bb   :  { %4745 = vst [vmem:[#allocation5 + $0x20] sm:$0xff] %v4729_v56  ;;  %v4714_v4 = vadd.f32 %v4798_v41, %v4691_v46 }
 0x2bd   :  { %v4730_v23 = vmax.f32 %v4714_v4, 0.0 }
 0x2be   :  { %v4692_v11 = vpop.trf.xlu0 }
 0x2bf   :  { %4746 = vst [vmem:[#allocation5 + $0x28] sm:$0xff] %v4730_v23  ;;  %v4715_v7 = vadd.f32 %v4798_v41, %v4692_v11 }
 0x2c1   :  { %v4731_v15 = vmax.f32 %v4715_v7, 0.0 }
 0x2c2   :  { %v4693_v8 = vpop.trf.xlu0 }
 0x2c3   :  { %4747 = vst [vmem:[#allocation5 + $0x30] sm:$0xff] %v4731_v15  ;;  %v4716_v31 = vadd.f32 %v4798_v41, %v4693_v8 }
 0x2c5   :  { %v4732_v34 = vmax.f32 %v4716_v31, 0.0 }
 0x2c6   :  { %v4694_v24 = vpop.trf.xlu0 }
 0x2c7   :  { %4748 = vst [vmem:[#allocation5 + $0x38] sm:$0xff] %v4732_v34  ;;  %v4717_v0 = vadd.f32 %v4798_v41, %v4694_v24 }
 0x2c9   :  { %v4733_v50 = vmax.f32 %v4717_v0, 0.0 }
 0x2ca   :  { %v4695_v43 = vpop.trf.xlu0 }
 0x2cb   :  { %4749 = vst [vmem:[#allocation5 + $0x40] sm:$0xff] %v4733_v50  ;;  %v4718_v49 = vadd.f32 %v4798_v41, %v4695_v43 }
 0x2cd   :  { %v4734_v3 = vmax.f32 %v4718_v49, 0.0 }
 0x2ce   :  { %v4696_v60 = vpop.trf.xlu0 }
 0x2cf   :  { %4750 = vst [vmem:[#allocation5 + $0x48] sm:$0xff] %v4734_v3  ;;  %v4719_v62 = vadd.f32 %v4798_v41, %v4696_v60 }
 0x2d1   :  { %v4735_v16 = vmax.f32 %v4719_v62, 0.0 }
 0x2d2   :  { %v4697_v33 = vpop.trf.xlu0 }
 0x2d3   :  { %4751 = vst [vmem:[#allocation5 + $0x50] sm:$0xff] %v4735_v16  ;;  %v4720_v54 = vadd.f32 %v4798_v41, %v4697_v33 }
 0x2d5   :  { %v4736_v52 = vmax.f32 %v4720_v54, 0.0 }
 0x2d6   :  { %v4698_v10 = vpop.trf.xlu0 }
 0x2d7   :  { %4752 = vst [vmem:[#allocation5 + $0x58] sm:$0xff] %v4736_v52  ;;  %v4721_v30 = vadd.f32 %v4798_v41, %v4698_v10 }
 0x2d9   :  { %v4737_v35 = vmax.f32 %v4721_v30, 0.0 }
 0x2da   :  { %v4699_v20 = vpop.trf.xlu0 }
 0x2db   :  { %4753 = vst [vmem:[#allocation5 + $0x60] sm:$0xff] %v4737_v35  ;;  %v4722_v36 = vadd.f32 %v4798_v41, %v4699_v20 }
 0x2dd   :  { %v4738_v38 = vmax.f32 %v4722_v36, 0.0 }
 0x2de   :  { %v4700_v27 = vpop.trf.xlu0 }
 0x2df   :  { %4754 = vst [vmem:[#allocation5 + $0x68] sm:$0xff] %v4738_v38  ;;  %v4723_v48 = vadd.f32 %v4798_v41, %v4700_v27 }
 0x2e1   :  { %v4739_v42 = vmax.f32 %v4723_v48, 0.0 }
 0x2e2   :  { %v4701_v25 = vpop.trf.xlu0 }
 0x2e3   :  { %4755 = vst [vmem:[#allocation5 + $0x70] sm:$0xff] %v4739_v42  ;;  %v4724_v28 = vadd.f32 %v4798_v41, %v4701_v25 }
 0x2e5   :  { %v4740_v21 = vmax.f32 %v4724_v28, 0.0 }
 0x2e7   :  { %4756 = vst [vmem:[#allocation5 + $0x78] sm:$0xff] %v4740_v21 }
 0x2e8   :  { %4761 = vsyncadd [#allocation4], 2032  ;;  %s5672_s4 = smov [#allocation5]  }
 0x2e9   :  { %s4762_s27 = sshll.u32 %s5672_s4, 4  ;;  %s4763_s27 = int_to_ptr.vmem [resolvable:$true] %s4762_s27 }
 0x2ea   :  { %s5644_s28 = scalar_lea.vmem %s4763_s27, 16  ;;  %s5648_s29 = scalar_lea.vmem %s4763_s27, 2048 }
 0x2eb   :  { %p5645_p5 = scmp.ne.s32.totalorder %s4763_s27, %s5644_s28  ;;  %p5649_p6 = scmp.lt.s32.totalorder %s4763_s27, %s4763_s27 }
 0x2ec   :  { %p5650_p7 = scmp.lt.s32.totalorder %s5648_s29, %s5644_s28 }
 0x2ee   :  { %p5651_p8 = por %p5650_p7, %p5649_p6 }
 0x2f0   :  { %p5652_p9 = pnand %p5651_p8, %p5645_p5 }
 0x2f2   :  { %5655 = shalt.err (!%p5652_p9)
}
 0x2f3   :  { %s5673_s30 = smov 16   ;;  %s5674_s3 = smov 1  }
 0x2f4   :  { %4768 = dma.vmem_to_hbm [thread:$0]  %s4763_s27, 16, %s6777_s5, [#allocation4], %s5673_s30, %s5673_s30, %s5674_s3  }
 0x2f5   :  { %5666 = dma.done.wait [#allocation4], 2048  }
 0x2f6   :  { %5667 = vsyncadd [#allocation4], 4294965248 }
 0x2f7   :  { %4772 = vsyncpa [#allocation3], 1 }
 0x2f8   :  { %4773 = vsyncpa [#allocation4], 1 }

</bundles_post_ra>
